<compile_context>
chip_gen: v6e
topology: v6e:2x2x1
jax: 0.10.0
libtpu: 0.0.40
codegen_flags: <defaults>
</compile_context>

<pallas_src>
import jax
import jax.numpy as jnp
from jax import lax
from jax.experimental import pallas as pl
from jax.experimental.pallas import tpu as pltpu  # noqa: F401  (kept for VMEM/params use when chunking)

LANE = 128


def lstm_mlp_kernel(x_ref, wih_ref, whh_ref, b_ref,
                    w1_ref, b1_ref, w2_ref, b2_ref, out_ref):
    """Full LSTM recurrence + 2-layer MLP head, single un-gridded block.

    x_ref   : (S, D_in)      input sequence
    wih_ref : (D_in, 4*HP)   input->gates weights (transposed, gate-lane-padded)
    whh_ref : (HP, 4*HP)     hidden->gates weights (transposed, padded)
    b_ref   : (1, 4*HP)      combined bias (b_ih + b_hh), padded, f32
    w1_ref  : (HP, HP), b1_ref: (1, HP)
    w2_ref  : (HP, OP), b2_ref: (1, OP)
    out_ref : (S, OP)        lane-dense padded output
    """
    S = x_ref.shape[0]
    HP = whh_ref.shape[0]

    wih = wih_ref[...]
    whh = whh_ref[...]            # hoisted once; stays in vregs across steps
    bias = b_ref[...]

    # Hoisted input projection: one (S, D_in) x (D_in, 4*HP) MXU pass, kept as
    # a register value (no VMEM scratch round-trip).
    xg = jnp.dot(x_ref[...].astype(wih.dtype), wih,
                 preferred_element_type=jnp.float32) + bias

    def sigm(v):
        # sigmoid(x) = 0.5 * (1 + tanh(x/2)): one EUP tanh + cheap VPU ops.
        return 0.5 * jnp.tanh(0.5 * v) + 0.5

    h = jnp.zeros((1, HP), jnp.float32)
    c = jnp.zeros((1, HP), jnp.float32)
    hs = []
    # S is static and small -> full unroll; hidden states never touch VMEM.
    for t in range(S):
        gates = xg[t:t + 1, :] + jnp.dot(
            h.astype(whh.dtype), whh, preferred_element_type=jnp.float32)
        # HP == 128*k -> every gate slice is a lane-aligned full-vreg view.
        i = sigm(gates[:, 0:HP])
        f = sigm(gates[:, HP:2 * HP])
        g = jnp.tanh(gates[:, 2 * HP:3 * HP])
        o = sigm(gates[:, 3 * HP:4 * HP])
        c = f * c + i * g
        h = o * jnp.tanh(c)
        hs.append(h)

    hseq = jnp.concatenate(hs, axis=0)                     # (S, HP), in vregs

    # MLP head over all time steps at once: Linear -> ReLU -> Linear.
    hid = jnp.maximum(
        jnp.dot(hseq.astype(w1_ref.dtype), w1_ref[...],
                preferred_element_type=jnp.float32) + b1_ref[...], 0.0)
    out_ref[...] = (
        jnp.dot(hid.astype(w2_ref.dtype), w2_ref[...],
                preferred_element_type=jnp.float32) + b2_ref[...])


def _round_up(n, m):
    return ((n + m - 1) // m) * m


def lstm_network_forward(data, params, weights_dtype=jnp.float32):
    """data: (S, D_in) float32.  Returns (S, O) float32.

    weights_dtype=jnp.bfloat16 halves weight DMA/VMEM and uses the v6e/v7x MXU
    bf16 path (f32 accumulation kept; gate elementwise math stays f32).
    """
    wih, whh, b, w1, b1, w2, b2 = params
    S, D_in = data.shape
    H = whh.shape[0]
    O = w2.shape[1]
    HP = _round_up(H, LANE)          # padded hidden width (lane-aligned gates)
    OP = _round_up(O, LANE)          # padded, lane-dense output width

    # --- Layout plumbing: zero-pad so each gate / the output is 128-lane wide.
    def pad_gate_cols(w):            # (rows, 4H) -> (rows, 4*HP), per-gate pad
        r = w.shape[0]
        w4 = w.reshape(r, 4, H)
        w4 = jnp.pad(w4, ((0, 0), (0, 0), (0, HP - H)))
        return w4.reshape(r, 4 * HP)

    wd = weights_dtype
    wih_p = pad_gate_cols(wih).astype(wd)                            # (D_in, 4*HP)
    whh_p = jnp.pad(pad_gate_cols(whh), ((0, HP - H), (0, 0))).astype(wd)  # (HP, 4*HP)
    b_p = pad_gate_cols(b)                                           # (1, 4*HP) f32
    w1_p = jnp.pad(w1, ((0, HP - H), (0, HP - H))).astype(wd)        # (HP, HP)
    b1_p = jnp.pad(b1, ((0, 0), (0, HP - H)))                        # (1, HP) f32
    w2_p = jnp.pad(w2, ((0, HP - H), (0, OP - O))).astype(wd)        # (HP, OP)
    b2_p = jnp.pad(b2, ((0, 0), (0, OP - O)))                        # (1, OP) f32

    full = lambda shape: pl.BlockSpec(shape, lambda: tuple(0 for _ in shape))

    out_p = pl.pallas_call(
        lstm_mlp_kernel,
        out_shape=jax.ShapeDtypeStruct((S, OP), jnp.float32),
        grid=(),
        in_specs=[
            full((S, D_in)),
            full((D_in, 4 * HP)),
            full((HP, 4 * HP)),
            full((1, 4 * HP)),
            full((HP, HP)),
            full((1, HP)),
            full((HP, OP)),
            full((1, OP)),
        ],
        out_specs=full((S, OP)),
    )(data, wih_p, whh_p, b_p, w1_p, b1_p, w2_p, b2_p)

    return out_p[:, :O]


def init_params(key, input_dim, hidden_dim, output_dim):
    """Deterministic init mirroring PyTorch's U(-1/sqrt(H), 1/sqrt(H)) ranges."""
    ks = jax.random.split(key, 8)
    s = 1.0 / jnp.sqrt(hidden_dim)
    u = lambda k, shape, scale: jax.random.uniform(
        k, shape, jnp.float32, -scale, scale)
    # stored transposed relative to PyTorch (out, in) layout
    wih = u(ks[0], (input_dim, 4 * hidden_dim), s)
    whh = u(ks[1], (hidden_dim, 4 * hidden_dim), s)
    b_ih = u(ks[2], (1, 4 * hidden_dim), s)
    b_hh = u(ks[3], (1, 4 * hidden_dim), s)
    b = b_ih + b_hh
    w1 = u(ks[4], (hidden_dim, hidden_dim), s)
    b1 = u(ks[5], (1, hidden_dim), s)
    w2 = u(ks[6], (hidden_dim, output_dim), s)
    b2 = u(ks[7], (1, output_dim), s)
    return (wih, whh, b, w1, b1, w2, b2)


def reference_forward(data, params):
    """Pure-JAX reference of the same math (for sanity check)."""
    wih, whh, b, w1, b1, w2, b2 = params
    H = whh.shape[0]

    def step(carry, x_t):
        h, c = carry
        gates = x_t[None, :] @ wih + h @ whh + b
        i = jax.nn.sigmoid(gates[:, 0:H])
        f = jax.nn.sigmoid(gates[:, H:2 * H])
        g = jnp.tanh(gates[:, 2 * H:3 * H])
        o = jax.nn.sigmoid(gates[:, 3 * H:4 * H])
        c = f * c + i * g
        h = o * jnp.tanh(c)
        return (h, c), h[0]

    h0 = jnp.zeros((1, H), jnp.float32)
    c0 = jnp.zeros((1, H), jnp.float32)
    _, hs = lax.scan(step, (h0, c0), data)
    hid = jnp.maximum(hs @ w1 + b1, 0.0)
    return hid @ w2 + b2


if __name__ == "__main__":
    SEQ, INPUT_DIM, HIDDEN_DIM, OUTPUT_DIM = 8, 16, 32, 8

    key = jax.random.PRNGKey(0)
    k_data, k_params = jax.random.split(key)
    data = jax.random.normal(k_data, (SEQ, INPUT_DIM), jnp.float32)
    params = init_params(k_params, INPUT_DIM, HIDDEN_DIM, OUTPUT_DIM)

    out = lstm_network_forward(data, params)        # f32 weights: exact parity
    out = jax.block_until_ready(out)

    ref = reference_forward(data, params)
    assert out.shape == (SEQ, OUTPUT_DIM)
    assert jnp.allclose(out, ref, atol=1e-4, rtol=1e-4)

    # weights_dtype=jnp.bfloat16 is the v6e/v7x drop-in (loosen tolerance ~2e-2).
    print("KERNEL_OK")
</pallas_src>

<mosaic_0001>
module attributes {stable_mosaic.version = 11 : i64} {
  func.func @lstm_mlp_kernel(%arg0: memref<8x16xf32, #tpu.memory_space<vmem>>, %arg1: memref<16x512xf32, #tpu.memory_space<vmem>>, %arg2: memref<128x512xf32, #tpu.memory_space<vmem>>, %arg3: memref<1x512xf32, #tpu.memory_space<vmem>>, %arg4: memref<128x128xf32, #tpu.memory_space<vmem>>, %arg5: memref<1x128xf32, #tpu.memory_space<vmem>>, %arg6: memref<128x128xf32, #tpu.memory_space<vmem>>, %arg7: memref<1x128xf32, #tpu.memory_space<vmem>>, %arg8: memref<8x128xf32, #tpu.memory_space<vmem>>) attributes {dimension_semantics = [], scalar_prefetch = 0 : i64, scratch_operands = 0 : i64, tpu.core_type = #tpu.core_type<tc>} {
    %c0 = arith.constant 0 : index
    %c0_0 = arith.constant 0 : index
    %0 = vector.load %arg1[%c0, %c0_0] : memref<16x512xf32, #tpu.memory_space<vmem>>, vector<16x512xf32>
    %c0_1 = arith.constant 0 : index
    %c0_2 = arith.constant 0 : index
    %1 = vector.load %arg2[%c0_1, %c0_2] : memref<128x512xf32, #tpu.memory_space<vmem>>, vector<128x512xf32>
    %c0_3 = arith.constant 0 : index
    %c0_4 = arith.constant 0 : index
    %2 = vector.load %arg3[%c0_3, %c0_4] : memref<1x512xf32, #tpu.memory_space<vmem>>, vector<1x512xf32>
    %c0_5 = arith.constant 0 : index
    %c0_6 = arith.constant 0 : index
    %3 = vector.load %arg0[%c0_5, %c0_6] : memref<8x16xf32, #tpu.memory_space<vmem>>, vector<8x16xf32>
    %cst = arith.constant dense<0.000000e+00> : vector<8x512xf32>
    %4 = tpu.matmul %3, %0, %cst {dimension_numbers = #tpu.dot_dimension_numbers<[1], [0], [0], [1], [0, 0, 1, 1], [], []>} : vector<8x16xf32>, vector<16x512xf32>, vector<8x512xf32> -> vector<8x512xf32>
    %5 = vector.broadcast %2 : vector<1x512xf32> to vector<8x512xf32>
    %6 = arith.addf %4, %5 : vector<8x512xf32>
    %cst_7 = arith.constant 0.000000e+00 : f32
    %7 = vector.broadcast %cst_7 : f32 to vector<1x128xf32>
    %cst_8 = arith.constant 0.000000e+00 : f32
    %8 = vector.broadcast %cst_8 : f32 to vector<1x128xf32>
    %9 = vector.extract_strided_slice %6 {offsets = [0, 0], sizes = [1, 512], strides = [1, 1]} : vector<8x512xf32> to vector<1x512xf32>
    %cst_9 = arith.constant dense<0.000000e+00> : vector<1x512xf32>
    %10 = tpu.matmul %7, %1, %cst_9 {dimension_numbers = #tpu.dot_dimension_numbers<[1], [0], [0], [1], [0, 0, 1, 1], [], []>} : vector<1x128xf32>, vector<128x512xf32>, vector<1x512xf32> -> vector<1x512xf32>
    %11 = arith.addf %9, %10 : vector<1x512xf32>
    %12 = vector.extract_strided_slice %11 {offsets = [0, 0], sizes = [1, 128], strides = [1, 1]} : vector<1x512xf32> to vector<1x128xf32>
    %cst_10 = arith.constant 5.000000e-01 : f32
    %13 = vector.broadcast %cst_10 : f32 to vector<1x128xf32>
    %14 = arith.mulf %13, %12 : vector<1x128xf32>
    %15 = math.tanh %14 : vector<1x128xf32>
    %cst_11 = arith.constant 5.000000e-01 : f32
    %16 = vector.broadcast %cst_11 : f32 to vector<1x128xf32>
    %17 = arith.mulf %16, %15 : vector<1x128xf32>
    %cst_12 = arith.constant 5.000000e-01 : f32
    %18 = vector.broadcast %cst_12 : f32 to vector<1x128xf32>
    %19 = arith.addf %17, %18 : vector<1x128xf32>
    %20 = vector.extract_strided_slice %11 {offsets = [0, 128], sizes = [1, 128], strides = [1, 1]} : vector<1x512xf32> to vector<1x128xf32>
    %cst_13 = arith.constant 5.000000e-01 : f32
    %21 = vector.broadcast %cst_13 : f32 to vector<1x128xf32>
    %22 = arith.mulf %21, %20 : vector<1x128xf32>
    %23 = math.tanh %22 : vector<1x128xf32>
    %cst_14 = arith.constant 5.000000e-01 : f32
    %24 = vector.broadcast %cst_14 : f32 to vector<1x128xf32>
    %25 = arith.mulf %24, %23 : vector<1x128xf32>
    %cst_15 = arith.constant 5.000000e-01 : f32
    %26 = vector.broadcast %cst_15 : f32 to vector<1x128xf32>
    %27 = arith.addf %25, %26 : vector<1x128xf32>
    %28 = vector.extract_strided_slice %11 {offsets = [0, 256], sizes = [1, 128], strides = [1, 1]} : vector<1x512xf32> to vector<1x128xf32>
    %29 = math.tanh %28 : vector<1x128xf32>
    %30 = vector.extract_strided_slice %11 {offsets = [0, 384], sizes = [1, 128], strides = [1, 1]} : vector<1x512xf32> to vector<1x128xf32>
    %cst_16 = arith.constant 5.000000e-01 : f32
    %31 = vector.broadcast %cst_16 : f32 to vector<1x128xf32>
    %32 = arith.mulf %31, %30 : vector<1x128xf32>
    %33 = math.tanh %32 : vector<1x128xf32>
    %cst_17 = arith.constant 5.000000e-01 : f32
    %34 = vector.broadcast %cst_17 : f32 to vector<1x128xf32>
    %35 = arith.mulf %34, %33 : vector<1x128xf32>
    %cst_18 = arith.constant 5.000000e-01 : f32
    %36 = vector.broadcast %cst_18 : f32 to vector<1x128xf32>
    %37 = arith.addf %35, %36 : vector<1x128xf32>
    %38 = arith.mulf %27, %8 : vector<1x128xf32>
    %39 = arith.mulf %19, %29 : vector<1x128xf32>
    %40 = arith.addf %38, %39 : vector<1x128xf32>
    %41 = math.tanh %40 : vector<1x128xf32>
    %42 = arith.mulf %37, %41 : vector<1x128xf32>
    %43 = vector.extract_strided_slice %6 {offsets = [1, 0], sizes = [1, 512], strides = [1, 1]} : vector<8x512xf32> to vector<1x512xf32>
    %cst_19 = arith.constant dense<0.000000e+00> : vector<1x512xf32>
    %44 = tpu.matmul %42, %1, %cst_19 {dimension_numbers = #tpu.dot_dimension_numbers<[1], [0], [0], [1], [0, 0, 1, 1], [], []>} : vector<1x128xf32>, vector<128x512xf32>, vector<1x512xf32> -> vector<1x512xf32>
    %45 = arith.addf %43, %44 : vector<1x512xf32>
    %46 = vector.extract_strided_slice %45 {offsets = [0, 0], sizes = [1, 128], strides = [1, 1]} : vector<1x512xf32> to vector<1x128xf32>
    %cst_20 = arith.constant 5.000000e-01 : f32
    %47 = vector.broadcast %cst_20 : f32 to vector<1x128xf32>
    %48 = arith.mulf %47, %46 : vector<1x128xf32>
    %49 = math.tanh %48 : vector<1x128xf32>
    %cst_21 = arith.constant 5.000000e-01 : f32
    %50 = vector.broadcast %cst_21 : f32 to vector<1x128xf32>
    %51 = arith.mulf %50, %49 : vector<1x128xf32>
    %cst_22 = arith.constant 5.000000e-01 : f32
    %52 = vector.broadcast %cst_22 : f32 to vector<1x128xf32>
    %53 = arith.addf %51, %52 : vector<1x128xf32>
    %54 = vector.extract_strided_slice %45 {offsets = [0, 128], sizes = [1, 128], strides = [1, 1]} : vector<1x512xf32> to vector<1x128xf32>
    %cst_23 = arith.constant 5.000000e-01 : f32
    %55 = vector.broadcast %cst_23 : f32 to vector<1x128xf32>
    %56 = arith.mulf %55, %54 : vector<1x128xf32>
    %57 = math.tanh %56 : vector<1x128xf32>
    %cst_24 = arith.constant 5.000000e-01 : f32
    %58 = vector.broadcast %cst_24 : f32 to vector<1x128xf32>
    %59 = arith.mulf %58, %57 : vector<1x128xf32>
    %cst_25 = arith.constant 5.000000e-01 : f32
    %60 = vector.broadcast %cst_25 : f32 to vector<1x128xf32>
    %61 = arith.addf %59, %60 : vector<1x128xf32>
    %62 = vector.extract_strided_slice %45 {offsets = [0, 256], sizes = [1, 128], strides = [1, 1]} : vector<1x512xf32> to vector<1x128xf32>
    %63 = math.tanh %62 : vector<1x128xf32>
    %64 = vector.extract_strided_slice %45 {offsets = [0, 384], sizes = [1, 128], strides = [1, 1]} : vector<1x512xf32> to vector<1x128xf32>
    %cst_26 = arith.constant 5.000000e-01 : f32
    %65 = vector.broadcast %cst_26 : f32 to vector<1x128xf32>
    %66 = arith.mulf %65, %64 : vector<1x128xf32>
    %67 = math.tanh %66 : vector<1x128xf32>
    %cst_27 = arith.constant 5.000000e-01 : f32
    %68 = vector.broadcast %cst_27 : f32 to vector<1x128xf32>
    %69 = arith.mulf %68, %67 : vector<1x128xf32>
    %cst_28 = arith.constant 5.000000e-01 : f32
    %70 = vector.broadcast %cst_28 : f32 to vector<1x128xf32>
    %71 = arith.addf %69, %70 : vector<1x128xf32>
    %72 = arith.mulf %61, %40 : vector<1x128xf32>
    %73 = arith.mulf %53, %63 : vector<1x128xf32>
    %74 = arith.addf %72, %73 : vector<1x128xf32>
    %75 = math.tanh %74 : vector<1x128xf32>
    %76 = arith.mulf %71, %75 : vector<1x128xf32>
    %77 = vector.extract_strided_slice %6 {offsets = [2, 0], sizes = [1, 512], strides = [1, 1]} : vector<8x512xf32> to vector<1x512xf32>
    %cst_29 = arith.constant dense<0.000000e+00> : vector<1x512xf32>
    %78 = tpu.matmul %76, %1, %cst_29 {dimension_numbers = #tpu.dot_dimension_numbers<[1], [0], [0], [1], [0, 0, 1, 1], [], []>} : vector<1x128xf32>, vector<128x512xf32>, vector<1x512xf32> -> vector<1x512xf32>
    %79 = arith.addf %77, %78 : vector<1x512xf32>
    %80 = vector.extract_strided_slice %79 {offsets = [0, 0], sizes = [1, 128], strides = [1, 1]} : vector<1x512xf32> to vector<1x128xf32>
    %cst_30 = arith.constant 5.000000e-01 : f32
    %81 = vector.broadcast %cst_30 : f32 to vector<1x128xf32>
    %82 = arith.mulf %81, %80 : vector<1x128xf32>
    %83 = math.tanh %82 : vector<1x128xf32>
    %cst_31 = arith.constant 5.000000e-01 : f32
    %84 = vector.broadcast %cst_31 : f32 to vector<1x128xf32>
    %85 = arith.mulf %84, %83 : vector<1x128xf32>
    %cst_32 = arith.constant 5.000000e-01 : f32
    %86 = vector.broadcast %cst_32 : f32 to vector<1x128xf32>
    %87 = arith.addf %85, %86 : vector<1x128xf32>
    %88 = vector.extract_strided_slice %79 {offsets = [0, 128], sizes = [1, 128], strides = [1, 1]} : vector<1x512xf32> to vector<1x128xf32>
    %cst_33 = arith.constant 5.000000e-01 : f32
    %89 = vector.broadcast %cst_33 : f32 to vector<1x128xf32>
    %90 = arith.mulf %89, %88 : vector<1x128xf32>
    %91 = math.tanh %90 : vector<1x128xf32>
    %cst_34 = arith.constant 5.000000e-01 : f32
    %92 = vector.broadcast %cst_34 : f32 to vector<1x128xf32>
    %93 = arith.mulf %92, %91 : vector<1x128xf32>
    %cst_35 = arith.constant 5.000000e-01 : f32
    %94 = vector.broadcast %cst_35 : f32 to vector<1x128xf32>
    %95 = arith.addf %93, %94 : vector<1x128xf32>
    %96 = vector.extract_strided_slice %79 {offsets = [0, 256], sizes = [1, 128], strides = [1, 1]} : vector<1x512xf32> to vector<1x128xf32>
    %97 = math.tanh %96 : vector<1x128xf32>
    %98 = vector.extract_strided_slice %79 {offsets = [0, 384], sizes = [1, 128], strides = [1, 1]} : vector<1x512xf32> to vector<1x128xf32>
    %cst_36 = arith.constant 5.000000e-01 : f32
    %99 = vector.broadcast %cst_36 : f32 to vector<1x128xf32>
    %100 = arith.mulf %99, %98 : vector<1x128xf32>
    %101 = math.tanh %100 : vector<1x128xf32>
    %cst_37 = arith.constant 5.000000e-01 : f32
    %102 = vector.broadcast %cst_37 : f32 to vector<1x128xf32>
    %103 = arith.mulf %102, %101 : vector<1x128xf32>
    %cst_38 = arith.constant 5.000000e-01 : f32
    %104 = vector.broadcast %cst_38 : f32 to vector<1x128xf32>
    %105 = arith.addf %103, %104 : vector<1x128xf32>
    %106 = arith.mulf %95, %74 : vector<1x128xf32>
    %107 = arith.mulf %87, %97 : vector<1x128xf32>
    %108 = arith.addf %106, %107 : vector<1x128xf32>
    %109 = math.tanh %108 : vector<1x128xf32>
    %110 = arith.mulf %105, %109 : vector<1x128xf32>
    %111 = vector.extract_strided_slice %6 {offsets = [3, 0], sizes = [1, 512], strides = [1, 1]} : vector<8x512xf32> to vector<1x512xf32>
    %cst_39 = arith.constant dense<0.000000e+00> : vector<1x512xf32>
    %112 = tpu.matmul %110, %1, %cst_39 {dimension_numbers = #tpu.dot_dimension_numbers<[1], [0], [0], [1], [0, 0, 1, 1], [], []>} : vector<1x128xf32>, vector<128x512xf32>, vector<1x512xf32> -> vector<1x512xf32>
    %113 = arith.addf %111, %112 : vector<1x512xf32>
    %114 = vector.extract_strided_slice %113 {offsets = [0, 0], sizes = [1, 128], strides = [1, 1]} : vector<1x512xf32> to vector<1x128xf32>
    %cst_40 = arith.constant 5.000000e-01 : f32
    %115 = vector.broadcast %cst_40 : f32 to vector<1x128xf32>
    %116 = arith.mulf %115, %114 : vector<1x128xf32>
    %117 = math.tanh %116 : vector<1x128xf32>
    %cst_41 = arith.constant 5.000000e-01 : f32
    %118 = vector.broadcast %cst_41 : f32 to vector<1x128xf32>
    %119 = arith.mulf %118, %117 : vector<1x128xf32>
    %cst_42 = arith.constant 5.000000e-01 : f32
    %120 = vector.broadcast %cst_42 : f32 to vector<1x128xf32>
    %121 = arith.addf %119, %120 : vector<1x128xf32>
    %122 = vector.extract_strided_slice %113 {offsets = [0, 128], sizes = [1, 128], strides = [1, 1]} : vector<1x512xf32> to vector<1x128xf32>
    %cst_43 = arith.constant 5.000000e-01 : f32
    %123 = vector.broadcast %cst_43 : f32 to vector<1x128xf32>
    %124 = arith.mulf %123, %122 : vector<1x128xf32>
    %125 = math.tanh %124 : vector<1x128xf32>
    %cst_44 = arith.constant 5.000000e-01 : f32
    %126 = vector.broadcast %cst_44 : f32 to vector<1x128xf32>
    %127 = arith.mulf %126, %125 : vector<1x128xf32>
    %cst_45 = arith.constant 5.000000e-01 : f32
    %128 = vector.broadcast %cst_45 : f32 to vector<1x128xf32>
    %129 = arith.addf %127, %128 : vector<1x128xf32>
    %130 = vector.extract_strided_slice %113 {offsets = [0, 256], sizes = [1, 128], strides = [1, 1]} : vector<1x512xf32> to vector<1x128xf32>
    %131 = math.tanh %130 : vector<1x128xf32>
    %132 = vector.extract_strided_slice %113 {offsets = [0, 384], sizes = [1, 128], strides = [1, 1]} : vector<1x512xf32> to vector<1x128xf32>
    %cst_46 = arith.constant 5.000000e-01 : f32
    %133 = vector.broadcast %cst_46 : f32 to vector<1x128xf32>
    %134 = arith.mulf %133, %132 : vector<1x128xf32>
    %135 = math.tanh %134 : vector<1x128xf32>
    %cst_47 = arith.constant 5.000000e-01 : f32
    %136 = vector.broadcast %cst_47 : f32 to vector<1x128xf32>
    %137 = arith.mulf %136, %135 : vector<1x128xf32>
    %cst_48 = arith.constant 5.000000e-01 : f32
    %138 = vector.broadcast %cst_48 : f32 to vector<1x128xf32>
    %139 = arith.addf %137, %138 : vector<1x128xf32>
    %140 = arith.mulf %129, %108 : vector<1x128xf32>
    %141 = arith.mulf %121, %131 : vector<1x128xf32>
    %142 = arith.addf %140, %141 : vector<1x128xf32>
    %143 = math.tanh %142 : vector<1x128xf32>
    %144 = arith.mulf %139, %143 : vector<1x128xf32>
    %145 = vector.extract_strided_slice %6 {offsets = [4, 0], sizes = [1, 512], strides = [1, 1]} : vector<8x512xf32> to vector<1x512xf32>
    %cst_49 = arith.constant dense<0.000000e+00> : vector<1x512xf32>
    %146 = tpu.matmul %144, %1, %cst_49 {dimension_numbers = #tpu.dot_dimension_numbers<[1], [0], [0], [1], [0, 0, 1, 1], [], []>} : vector<1x128xf32>, vector<128x512xf32>, vector<1x512xf32> -> vector<1x512xf32>
    %147 = arith.addf %145, %146 : vector<1x512xf32>
    %148 = vector.extract_strided_slice %147 {offsets = [0, 0], sizes = [1, 128], strides = [1, 1]} : vector<1x512xf32> to vector<1x128xf32>
    %cst_50 = arith.constant 5.000000e-01 : f32
    %149 = vector.broadcast %cst_50 : f32 to vector<1x128xf32>
    %150 = arith.mulf %149, %148 : vector<1x128xf32>
    %151 = math.tanh %150 : vector<1x128xf32>
    %cst_51 = arith.constant 5.000000e-01 : f32
    %152 = vector.broadcast %cst_51 : f32 to vector<1x128xf32>
    %153 = arith.mulf %152, %151 : vector<1x128xf32>
    %cst_52 = arith.constant 5.000000e-01 : f32
    %154 = vector.broadcast %cst_52 : f32 to vector<1x128xf32>
    %155 = arith.addf %153, %154 : vector<1x128xf32>
    %156 = vector.extract_strided_slice %147 {offsets = [0, 128], sizes = [1, 128], strides = [1, 1]} : vector<1x512xf32> to vector<1x128xf32>
    %cst_53 = arith.constant 5.000000e-01 : f32
    %157 = vector.broadcast %cst_53 : f32 to vector<1x128xf32>
    %158 = arith.mulf %157, %156 : vector<1x128xf32>
    %159 = math.tanh %158 : vector<1x128xf32>
    %cst_54 = arith.constant 5.000000e-01 : f32
    %160 = vector.broadcast %cst_54 : f32 to vector<1x128xf32>
    %161 = arith.mulf %160, %159 : vector<1x128xf32>
    %cst_55 = arith.constant 5.000000e-01 : f32
    %162 = vector.broadcast %cst_55 : f32 to vector<1x128xf32>
    %163 = arith.addf %161, %162 : vector<1x128xf32>
    %164 = vector.extract_strided_slice %147 {offsets = [0, 256], sizes = [1, 128], strides = [1, 1]} : vector<1x512xf32> to vector<1x128xf32>
    %165 = math.tanh %164 : vector<1x128xf32>
    %166 = vector.extract_strided_slice %147 {offsets = [0, 384], sizes = [1, 128], strides = [1, 1]} : vector<1x512xf32> to vector<1x128xf32>
    %cst_56 = arith.constant 5.000000e-01 : f32
    %167 = vector.broadcast %cst_56 : f32 to vector<1x128xf32>
    %168 = arith.mulf %167, %166 : vector<1x128xf32>
    %169 = math.tanh %168 : vector<1x128xf32>
    %cst_57 = arith.constant 5.000000e-01 : f32
    %170 = vector.broadcast %cst_57 : f32 to vector<1x128xf32>
    %171 = arith.mulf %170, %169 : vector<1x128xf32>
    %cst_58 = arith.constant 5.000000e-01 : f32
    %172 = vector.broadcast %cst_58 : f32 to vector<1x128xf32>
    %173 = arith.addf %171, %172 : vector<1x128xf32>
    %174 = arith.mulf %163, %142 : vector<1x128xf32>
    %175 = arith.mulf %155, %165 : vector<1x128xf32>
    %176 = arith.addf %174, %175 : vector<1x128xf32>
    %177 = math.tanh %176 : vector<1x128xf32>
    %178 = arith.mulf %173, %177 : vector<1x128xf32>
    %179 = vector.extract_strided_slice %6 {offsets = [5, 0], sizes = [1, 512], strides = [1, 1]} : vector<8x512xf32> to vector<1x512xf32>
    %cst_59 = arith.constant dense<0.000000e+00> : vector<1x512xf32>
    %180 = tpu.matmul %178, %1, %cst_59 {dimension_numbers = #tpu.dot_dimension_numbers<[1], [0], [0], [1], [0, 0, 1, 1], [], []>} : vector<1x128xf32>, vector<128x512xf32>, vector<1x512xf32> -> vector<1x512xf32>
    %181 = arith.addf %179, %180 : vector<1x512xf32>
    %182 = vector.extract_strided_slice %181 {offsets = [0, 0], sizes = [1, 128], strides = [1, 1]} : vector<1x512xf32> to vector<1x128xf32>
    %cst_60 = arith.constant 5.000000e-01 : f32
    %183 = vector.broadcast %cst_60 : f32 to vector<1x128xf32>
    %184 = arith.mulf %183, %182 : vector<1x128xf32>
    %185 = math.tanh %184 : vector<1x128xf32>
    %cst_61 = arith.constant 5.000000e-01 : f32
    %186 = vector.broadcast %cst_61 : f32 to vector<1x128xf32>
    %187 = arith.mulf %186, %185 : vector<1x128xf32>
    %cst_62 = arith.constant 5.000000e-01 : f32
    %188 = vector.broadcast %cst_62 : f32 to vector<1x128xf32>
    %189 = arith.addf %187, %188 : vector<1x128xf32>
    %190 = vector.extract_strided_slice %181 {offsets = [0, 128], sizes = [1, 128], strides = [1, 1]} : vector<1x512xf32> to vector<1x128xf32>
    %cst_63 = arith.constant 5.000000e-01 : f32
    %191 = vector.broadcast %cst_63 : f32 to vector<1x128xf32>
    %192 = arith.mulf %191, %190 : vector<1x128xf32>
    %193 = math.tanh %192 : vector<1x128xf32>
    %cst_64 = arith.constant 5.000000e-01 : f32
    %194 = vector.broadcast %cst_64 : f32 to vector<1x128xf32>
    %195 = arith.mulf %194, %193 : vector<1x128xf32>
    %cst_65 = arith.constant 5.000000e-01 : f32
    %196 = vector.broadcast %cst_65 : f32 to vector<1x128xf32>
    %197 = arith.addf %195, %196 : vector<1x128xf32>
    %198 = vector.extract_strided_slice %181 {offsets = [0, 256], sizes = [1, 128], strides = [1, 1]} : vector<1x512xf32> to vector<1x128xf32>
    %199 = math.tanh %198 : vector<1x128xf32>
    %200 = vector.extract_strided_slice %181 {offsets = [0, 384], sizes = [1, 128], strides = [1, 1]} : vector<1x512xf32> to vector<1x128xf32>
    %cst_66 = arith.constant 5.000000e-01 : f32
    %201 = vector.broadcast %cst_66 : f32 to vector<1x128xf32>
    %202 = arith.mulf %201, %200 : vector<1x128xf32>
    %203 = math.tanh %202 : vector<1x128xf32>
    %cst_67 = arith.constant 5.000000e-01 : f32
    %204 = vector.broadcast %cst_67 : f32 to vector<1x128xf32>
    %205 = arith.mulf %204, %203 : vector<1x128xf32>
    %cst_68 = arith.constant 5.000000e-01 : f32
    %206 = vector.broadcast %cst_68 : f32 to vector<1x128xf32>
    %207 = arith.addf %205, %206 : vector<1x128xf32>
    %208 = arith.mulf %197, %176 : vector<1x128xf32>
    %209 = arith.mulf %189, %199 : vector<1x128xf32>
    %210 = arith.addf %208, %209 : vector<1x128xf32>
    %211 = math.tanh %210 : vector<1x128xf32>
    %212 = arith.mulf %207, %211 : vector<1x128xf32>
    %213 = vector.extract_strided_slice %6 {offsets = [6, 0], sizes = [1, 512], strides = [1, 1]} : vector<8x512xf32> to vector<1x512xf32>
    %cst_69 = arith.constant dense<0.000000e+00> : vector<1x512xf32>
    %214 = tpu.matmul %212, %1, %cst_69 {dimension_numbers = #tpu.dot_dimension_numbers<[1], [0], [0], [1], [0, 0, 1, 1], [], []>} : vector<1x128xf32>, vector<128x512xf32>, vector<1x512xf32> -> vector<1x512xf32>
    %215 = arith.addf %213, %214 : vector<1x512xf32>
    %216 = vector.extract_strided_slice %215 {offsets = [0, 0], sizes = [1, 128], strides = [1, 1]} : vector<1x512xf32> to vector<1x128xf32>
    %cst_70 = arith.constant 5.000000e-01 : f32
    %217 = vector.broadcast %cst_70 : f32 to vector<1x128xf32>
    %218 = arith.mulf %217, %216 : vector<1x128xf32>
    %219 = math.tanh %218 : vector<1x128xf32>
    %cst_71 = arith.constant 5.000000e-01 : f32
    %220 = vector.broadcast %cst_71 : f32 to vector<1x128xf32>
    %221 = arith.mulf %220, %219 : vector<1x128xf32>
    %cst_72 = arith.constant 5.000000e-01 : f32
    %222 = vector.broadcast %cst_72 : f32 to vector<1x128xf32>
    %223 = arith.addf %221, %222 : vector<1x128xf32>
    %224 = vector.extract_strided_slice %215 {offsets = [0, 128], sizes = [1, 128], strides = [1, 1]} : vector<1x512xf32> to vector<1x128xf32>
    %cst_73 = arith.constant 5.000000e-01 : f32
    %225 = vector.broadcast %cst_73 : f32 to vector<1x128xf32>
    %226 = arith.mulf %225, %224 : vector<1x128xf32>
    %227 = math.tanh %226 : vector<1x128xf32>
    %cst_74 = arith.constant 5.000000e-01 : f32
    %228 = vector.broadcast %cst_74 : f32 to vector<1x128xf32>
    %229 = arith.mulf %228, %227 : vector<1x128xf32>
    %cst_75 = arith.constant 5.000000e-01 : f32
    %230 = vector.broadcast %cst_75 : f32 to vector<1x128xf32>
    %231 = arith.addf %229, %230 : vector<1x128xf32>
    %232 = vector.extract_strided_slice %215 {offsets = [0, 256], sizes = [1, 128], strides = [1, 1]} : vector<1x512xf32> to vector<1x128xf32>
    %233 = math.tanh %232 : vector<1x128xf32>
    %234 = vector.extract_strided_slice %215 {offsets = [0, 384], sizes = [1, 128], strides = [1, 1]} : vector<1x512xf32> to vector<1x128xf32>
    %cst_76 = arith.constant 5.000000e-01 : f32
    %235 = vector.broadcast %cst_76 : f32 to vector<1x128xf32>
    %236 = arith.mulf %235, %234 : vector<1x128xf32>
    %237 = math.tanh %236 : vector<1x128xf32>
    %cst_77 = arith.constant 5.000000e-01 : f32
    %238 = vector.broadcast %cst_77 : f32 to vector<1x128xf32>
    %239 = arith.mulf %238, %237 : vector<1x128xf32>
    %cst_78 = arith.constant 5.000000e-01 : f32
    %240 = vector.broadcast %cst_78 : f32 to vector<1x128xf32>
    %241 = arith.addf %239, %240 : vector<1x128xf32>
    %242 = arith.mulf %231, %210 : vector<1x128xf32>
    %243 = arith.mulf %223, %233 : vector<1x128xf32>
    %244 = arith.addf %242, %243 : vector<1x128xf32>
    %245 = math.tanh %244 : vector<1x128xf32>
    %246 = arith.mulf %241, %245 : vector<1x128xf32>
    %247 = vector.extract_strided_slice %6 {offsets = [7, 0], sizes = [1, 512], strides = [1, 1]} : vector<8x512xf32> to vector<1x512xf32>
    %cst_79 = arith.constant dense<0.000000e+00> : vector<1x512xf32>
    %248 = tpu.matmul %246, %1, %cst_79 {dimension_numbers = #tpu.dot_dimension_numbers<[1], [0], [0], [1], [0, 0, 1, 1], [], []>} : vector<1x128xf32>, vector<128x512xf32>, vector<1x512xf32> -> vector<1x512xf32>
    %249 = arith.addf %247, %248 : vector<1x512xf32>
    %250 = vector.extract_strided_slice %249 {offsets = [0, 0], sizes = [1, 128], strides = [1, 1]} : vector<1x512xf32> to vector<1x128xf32>
    %cst_80 = arith.constant 5.000000e-01 : f32
    %251 = vector.broadcast %cst_80 : f32 to vector<1x128xf32>
    %252 = arith.mulf %251, %250 : vector<1x128xf32>
    %253 = math.tanh %252 : vector<1x128xf32>
    %cst_81 = arith.constant 5.000000e-01 : f32
    %254 = vector.broadcast %cst_81 : f32 to vector<1x128xf32>
    %255 = arith.mulf %254, %253 : vector<1x128xf32>
    %cst_82 = arith.constant 5.000000e-01 : f32
    %256 = vector.broadcast %cst_82 : f32 to vector<1x128xf32>
    %257 = arith.addf %255, %256 : vector<1x128xf32>
    %258 = vector.extract_strided_slice %249 {offsets = [0, 128], sizes = [1, 128], strides = [1, 1]} : vector<1x512xf32> to vector<1x128xf32>
    %cst_83 = arith.constant 5.000000e-01 : f32
    %259 = vector.broadcast %cst_83 : f32 to vector<1x128xf32>
    %260 = arith.mulf %259, %258 : vector<1x128xf32>
    %261 = math.tanh %260 : vector<1x128xf32>
    %cst_84 = arith.constant 5.000000e-01 : f32
    %262 = vector.broadcast %cst_84 : f32 to vector<1x128xf32>
    %263 = arith.mulf %262, %261 : vector<1x128xf32>
    %cst_85 = arith.constant 5.000000e-01 : f32
    %264 = vector.broadcast %cst_85 : f32 to vector<1x128xf32>
    %265 = arith.addf %263, %264 : vector<1x128xf32>
    %266 = vector.extract_strided_slice %249 {offsets = [0, 256], sizes = [1, 128], strides = [1, 1]} : vector<1x512xf32> to vector<1x128xf32>
    %267 = math.tanh %266 : vector<1x128xf32>
    %268 = vector.extract_strided_slice %249 {offsets = [0, 384], sizes = [1, 128], strides = [1, 1]} : vector<1x512xf32> to vector<1x128xf32>
    %cst_86 = arith.constant 5.000000e-01 : f32
    %269 = vector.broadcast %cst_86 : f32 to vector<1x128xf32>
    %270 = arith.mulf %269, %268 : vector<1x128xf32>
    %271 = math.tanh %270 : vector<1x128xf32>
    %cst_87 = arith.constant 5.000000e-01 : f32
    %272 = vector.broadcast %cst_87 : f32 to vector<1x128xf32>
    %273 = arith.mulf %272, %271 : vector<1x128xf32>
    %cst_88 = arith.constant 5.000000e-01 : f32
    %274 = vector.broadcast %cst_88 : f32 to vector<1x128xf32>
    %275 = arith.addf %273, %274 : vector<1x128xf32>
    %276 = arith.mulf %265, %244 : vector<1x128xf32>
    %277 = arith.mulf %257, %267 : vector<1x128xf32>
    %278 = arith.addf %276, %277 : vector<1x128xf32>
    %279 = math.tanh %278 : vector<1x128xf32>
    %280 = arith.mulf %275, %279 : vector<1x128xf32>
    %281 = tpu.concatenate %42, %76, %110, %144, %178, %212, %246, %280 in 0 : vector<1x128xf32>, vector<1x128xf32>, vector<1x128xf32>, vector<1x128xf32>, vector<1x128xf32>, vector<1x128xf32>, vector<1x128xf32>, vector<1x128xf32> -> vector<8x128xf32>
    %c0_89 = arith.constant 0 : index
    %c0_90 = arith.constant 0 : index
    %282 = vector.load %arg4[%c0_89, %c0_90] : memref<128x128xf32, #tpu.memory_space<vmem>>, vector<128x128xf32>
    %cst_91 = arith.constant dense<0.000000e+00> : vector<8x128xf32>
    %283 = tpu.matmul %281, %282, %cst_91 {dimension_numbers = #tpu.dot_dimension_numbers<[1], [0], [0], [1], [0, 0, 1, 1], [], []>} : vector<8x128xf32>, vector<128x128xf32>, vector<8x128xf32> -> vector<8x128xf32>
    %c0_92 = arith.constant 0 : index
    %c0_93 = arith.constant 0 : index
    %284 = vector.load %arg5[%c0_92, %c0_93] : memref<1x128xf32, #tpu.memory_space<vmem>>, vector<1x128xf32>
    %285 = vector.broadcast %284 : vector<1x128xf32> to vector<8x128xf32>
    %286 = arith.addf %283, %285 : vector<8x128xf32>
    %cst_94 = arith.constant 0.000000e+00 : f32
    %287 = vector.broadcast %cst_94 : f32 to vector<8x128xf32>
    %288 = arith.maximumf %286, %287 : vector<8x128xf32>
    %c0_95 = arith.constant 0 : index
    %c0_96 = arith.constant 0 : index
    %289 = vector.load %arg6[%c0_95, %c0_96] : memref<128x128xf32, #tpu.memory_space<vmem>>, vector<128x128xf32>
    %cst_97 = arith.constant dense<0.000000e+00> : vector<8x128xf32>
    %290 = tpu.matmul %288, %289, %cst_97 {dimension_numbers = #tpu.dot_dimension_numbers<[1], [0], [0], [1], [0, 0, 1, 1], [], []>} : vector<8x128xf32>, vector<128x128xf32>, vector<8x128xf32> -> vector<8x128xf32>
    %c0_98 = arith.constant 0 : index
    %c0_99 = arith.constant 0 : index
    %291 = vector.load %arg7[%c0_98, %c0_99] : memref<1x128xf32, #tpu.memory_space<vmem>>, vector<1x128xf32>
    %292 = vector.broadcast %291 : vector<1x128xf32> to vector<8x128xf32>
    %293 = arith.addf %290, %292 : vector<8x128xf32>
    %c0_100 = arith.constant 0 : index
    %c0_101 = arith.constant 0 : index
    %294 = vector.load %arg8[%c0_100, %c0_101] : memref<8x128xf32, #tpu.memory_space<vmem>>, vector<8x128xf32>
    tpu.vector_store %arg8[%c0_100, %c0_101], %293 {strides = array<i32>} : memref<8x128xf32, #tpu.memory_space<vmem>>, vector<8x128xf32>,
    return
  }
}

</mosaic_0001>

<bundles_post_ra>
// kernel: tpu_custom_call.1
= control target key start
LH: loop header
LB: loop body
LE: loop exit
PB: predicated region body
PF: predicated region fallthrough
CT: control target
= control target key end

     0   :  { %13 = vsyncpa [#allocation3], 0  ;;  %s3393_s0 = inlined_call_operand.hbm [shape: f32[8,16], index: 0, kind: input, shape index: {}]   ;;  %s3394_s1 = inlined_call_operand.hbm [shape: f32[16,512], index: 1, kind: input, shape index: {}]   ;;  %s3395_s2 = inlined_call_operand.hbm [shape: f32[128,512], index: 2, kind: input, shape index: {}]   ;;  %s3396_s3 = inlined_call_operand.vmem [shape: f32[1,512], index: 3, kind: input, shape index: {}]   ;;  %s3397_s4 = inlined_call_operand.hbm [shape: f32[128,128], index: 4, kind: input, shape index: {}]   ;;  %s3398_s5 = inlined_call_operand.vmem [shape: f32[1,128], index: 5, kind: input, shape index: {}]   ;;  %s3399_s6 = inlined_call_operand.hbm [shape: f32[128,128], index: 6, kind: input, shape index: {}]   ;;  %s3400_s7 = inlined_call_operand.vmem [shape: f32[1,128], index: 7, kind: input, shape index: {}]   ;;  %s3401_s8 = inlined_call_operand.hbm [shape: f32[8,128], index: 8, kind: output, shape index: {}]  }
   0x1   :  { %14 = vsyncpa [#allocation6], 0 }
   0x2   :  { %15 = vsyncpa [#allocation9], 0 }
   0x3   :  { %16 = vsyncpa [#allocation4], 0  ;;  %s2383_s27 = smov [#allocation5]  }
   0x4   :  { %s32_s28 = sshll.u32 %s2383_s27, 4  ;;  %s33_s28 = int_to_ptr.vmem [resolvable:$true] %s32_s28 }
   0x5   :  { %s2263_s29 = scalar_lea.vmem %s33_s28, 1024  ;;  %p2268_p1 = scmp.lt.s32.totalorder %s33_s28, %s33_s28 }
   0x6   :  { %p2264_p0 = scmp.ne.s32.totalorder %s33_s28, %s2263_s29  ;;  %p2269_p2 = scmp.lt.s32.totalorder %s2263_s29, %s2263_s29 }
   0x8   :  { %p2270_p3 = por %p2269_p2, %p2268_p1 }
   0xa   :  { %p2271_p4 = pnand %p2270_p3, %p2264_p0 }
   0xc   :  { %2274 = shalt.err (!%p2271_p4)
}
   0xd   :  { %s2384_s30 = smov 512   ;;  %s2385_s9 = smov 32  }
   0xe   :  { %38 = dma.hbm_to_vmem [thread:$0]  %s3394_s1, 1024, %s33_s28, [#allocation6], %s2384_s30, %s2384_s30, %s2385_s9  }
   0xf   :  { %s2386_s12 = smov [#allocation8]  }
  0x10   :  { %s58_s13 = sshll.u32 %s2386_s12, 4  ;;  %s59_s13 = int_to_ptr.vmem [resolvable:$true] %s58_s13 }
  0x11   :  { %s2283_s14 = scalar_lea.vmem %s59_s13, 2048  ;;  %p2288_p6 = scmp.lt.s32.totalorder %s59_s13, %s59_s13 }
  0x12   :  { %p2284_p5 = scmp.ne.s32.totalorder %s59_s13, %s2283_s14  ;;  %p2289_p7 = scmp.lt.s32.totalorder %s2283_s14, %s2283_s14 }
  0x14   :  { %p2290_p8 = por %p2289_p7, %p2288_p6 }
  0x16   :  { %p2291_p9 = pnand %p2290_p8, %p2284_p5 }
  0x18   :  { %2294 = shalt.err (!%p2291_p9)
}
  0x19   :  { %s2387_s15 = smov 128   ;;  %s2388_s16 = smov 8  }
  0x1a   :  { %64 = dma.hbm_to_vmem [thread:$0]  %s3397_s4, 2048, %s59_s13, [#allocation9], %s2387_s15, %s2387_s15, %s2388_s16  }
  0x1b   :  { %s2389_s1 = smov [#allocation2]   ;;  %s2390_s20 = smov [#allocation7]  }
  0x1c   :  { %s23_s19 = sshll.u32 %s2389_s1, 4  ;;  %s44_s21 = sshll.u32 %s2390_s20, 4  ;;  %s24_s19 = int_to_ptr.vmem [resolvable:$true] %s23_s19  ;;  %s45_s21 = int_to_ptr.vmem [resolvable:$true] %s44_s21 }
  0x1d   :  { %s2303_s22 = scalar_lea.vmem %s24_s19, 128  ;;  %p2308_p11 = scmp.lt.s32.totalorder %s24_s19, %s24_s19 }
  0x1e   :  { %p2304_p10 = scmp.ne.s32.totalorder %s24_s19, %s2303_s22  ;;  %p2309_p12 = scmp.lt.s32.totalorder %s2303_s22, %s2303_s22 }
  0x20   :  { %p2310_p13 = por %p2309_p12, %p2308_p11 }
  0x22   :  { %p2311_p0 = pnand %p2310_p13, %p2304_p10 }
  0x24   :  { %2314 = shalt.err (!%p2311_p0)
}
  0x25   :  { %26 = dma.hbm_to_vmem [thread:$0]  %s3393_s0, 128, %s24_s19, [#allocation3]  }
  0x26   :  { %s2323_s25 = scalar_lea.vmem %s45_s21, 8192  ;;  %p2328_p2 = scmp.lt.s32.totalorder %s45_s21, %s45_s21 }
  0x27   :  { %p2324_p1 = scmp.ne.s32.totalorder %s45_s21, %s2323_s25  ;;  %p2329_p3 = scmp.lt.s32.totalorder %s2323_s25, %s2323_s25 }
  0x29   :  { %p2330_p4 = por %p2329_p3, %p2328_p2 }
  0x2b   :  { %p2331_p5 = pnand %p2330_p4, %p2324_p1 }
  0x2d   :  { %2334 = shalt.err (!%p2331_p5)
}
  0x2e   :  { %50 = dma.hbm_to_vmem [thread:$0]  %s3395_s2, 8192, %s45_s21, [#allocation6], %s2384_s30, %s2384_s30, %s2385_s9  }
  0x2f   :  { %s2391_s27 = smov [#allocation10]  }
  0x30   :  { %s72_s28 = sshll.u32 %s2391_s27, 4  ;;  %s73_s28 = int_to_ptr.vmem [resolvable:$true] %s72_s28 }
  0x31   :  { %s2343_s29 = scalar_lea.vmem %s73_s28, 2048  ;;  %p2348_p7 = scmp.lt.s32.totalorder %s73_s28, %s73_s28 }
  0x32   :  { %p2344_p6 = scmp.ne.s32.totalorder %s73_s28, %s2343_s29  ;;  %p2349_p8 = scmp.lt.s32.totalorder %s2343_s29, %s2343_s29 }
  0x34   :  { %p2350_p9 = por %p2349_p8, %p2348_p7 }
  0x36   :  { %p2351_p10 = pnand %p2350_p9, %p2344_p6 }
  0x38   :  { %2354 = shalt.err (!%p2351_p10)
}
  0x39   :  { %78 = dma.hbm_to_vmem [thread:$0]  %s3399_s6, 2048, %s73_s28, [#allocation9], %s2387_s15, %s2387_s15, %s2388_s16  }
  0x3a   :  { %2375 = dma.done.wait [#allocation3], 128  }
  0x3b   :  { %2376 = vsyncadd [#allocation3], 4294967168 }
  0x3c   :  { %2377 = dma.done.wait [#allocation6], 9216  }
  0x3d   :  { %2378 = vsyncadd [#allocation6], 4294958080 }
  0x3e   :  { %2379 = dma.done.wait [#allocation9], 4096  }
  0x3f   :  { %2380 = vsyncadd [#allocation9], 4294963200  ;;  %v3402_v0 = vmov 0.0   ;;  %v101_v1 = vld [vmem:[#allocation5 + $0x28] sm:$0xff]  ;;  %v103_v2 = vld [vmem:[#allocation5 + $0x38] sm:$0xff]  ;;  %vm191_vm0 = vcmask 130048  }
  0x40   :  { %259 = vmatprep.mubr.f32.mxu0 %v3402_v0  ;;  %330 = vmatprep.mubr.f32.mxu1 %v3402_v0  ;;  %v100_v3 = vld [vmem:[#allocation5 + $0x20] sm:$0xff]  ;;  %v102_v4 = vld [vmem:[#allocation5 + $0x30] sm:$0xff]  ;;  %v97_v5 = vld [vmem:[#allocation5 + $0x8] sm:$0xff]  ;;  %vm1772_vm1 = vcmask 1040384   ;;  %vm1774_vm2 = vcmask 1041408   ;;  %vm1776_vm3 = vcmask 1042432  }
  0x41   :  { %223 = vmatprep.subr.mxu0 %v101_v1  ;;  %294 = vmatprep.subr.mxu1 %v103_v2  ;;  %v99_v6 = vld [vmem:[#allocation5 + $0x18] sm:$0xff]  ;;  %v96_v7 = vld [vmem:[#allocation5] sm:$0xff]  ;;  %v98_v8 = vld [vmem:[#allocation5 + $0x10] sm:$0xff]  ;;  %vm1778_vm4 = vcmask 1043456   ;;  %vm1780_vm5 = vcmask 1044480   ;;  %vm1782_vm6 = vcmask 1045504  }
  0x42   :  { %224 = vmatpush1.msra.mxu0 %v100_v3  ;;  %295 = vmatpush1.msra.mxu1 %v102_v4  ;;  %v169_v9 = vld [vmem:[#allocation2] sm:$0xff]  ;;  %v2469_v10 = vld [vmem:[#allocation7 + $0x1e8] sm:$0xff]  ;;  %v2473_v12 = vld [vmem:[#allocation7 + $0x1e0] sm:$0xff]  ;;  %vm2393_vm7 = vmmov 0   ;;  %vm1784_vm8 = vcmask 1046528   ;;  %s2394_s12 = smov [#allocation11]  }
  0x43   :  { %225 = vmatprep.subr.mxu0 %v97_v5  ;;  %296 = vmatprep.subr.mxu1 %v99_v6  ;;  %3502 = vst [vmem:[#allocation16_spill] sm:$0xff] %v2469_v10  ;;  %v2471_v11 = vld [vmem:[#allocation7 + $0x1f8] sm:$0xff]  ;;  %v2475_v13 = vld [vmem:[#allocation7 + $0x1f0] sm:$0xff]  ;;  %v2478_v14 = vld [vmem:[#allocation7 + $0x1c8] sm:$0xff]  ;;  %s1980_s13 = sshll.u32 %s2394_s12, 4  ;;  %s1981_s13 = int_to_ptr.vmem [resolvable:$true] %s1980_s13 }
  0x44   :  { %3503 = vst [vmem:[#allocation17_spill] sm:$0xff] %v2471_v11  ;;  %226 = vmatpush1.msra.mxu0 %v96_v7  ;;  %297 = vmatpush1.msra.mxu1 %v98_v8  ;;  %v2480_v15 = vld [vmem:[#allocation7 + $0x1d8] sm:$0xff]  ;;  %v2483_v16 = vld [vmem:[#allocation7 + $0x1c0] sm:$0xff]  ;;  %v2485_v17 = vld [vmem:[#allocation7 + $0x1d0] sm:$0xff]  ;;  %s2355_s14 = scalar_lea.vmem %s1981_s13, 128  ;;  %p2360_p12 = scmp.lt.s32.totalorder %s1981_s13, %s1981_s13 }
  0x45   :  { %1991 = vmatmul.mubr.msk.f32.vlgmr.msra.gmra.mxu0 %vm191_vm0, %v169_v9  ;;  %337 = vmatprep.subr.mxu0 %v2469_v10  ;;  %v2489_v18 = vld [vmem:[#allocation7 + $0x1a8] sm:$0xff]  ;;  %v2491_v19 = vld [vmem:[#allocation7 + $0x1b8] sm:$0xff]  ;;  %v2495_v20 = vld [vmem:[#allocation7 + $0x1a0] sm:$0xff]  ;;  %p2356_p11 = scmp.ne.s32.totalorder %s1981_s13, %s2355_s14  ;;  %p2361_p13 = scmp.lt.s32.totalorder %s2355_s14, %s2355_s14 }
  0x46   :  { %408 = vmatprep.subr.mxu1 %v2471_v11  ;;  %1992 = vmatmul.mubr.msk.f32.vlgmr.msra.gmra.mxu1 %vm191_vm0, %v169_v9  ;;  %v2497_v21 = vld [vmem:[#allocation7 + $0x1b0] sm:$0xff]  ;;  %v2501_v22 = vld [vmem:[#allocation7 + $0x188] sm:$0xff]  ;;  %v2503_v23 = vld [vmem:[#allocation7 + $0x198] sm:$0xff] }
  0x47   :  { %338 = vmatpush1.msra.mxu0 %v2473_v12  ;;  %409 = vmatpush1.msra.mxu1 %v2475_v13  ;;  %v2507_v24 = vld [vmem:[#allocation7 + $0x180] sm:$0xff]  ;;  %v2509_v25 = vld [vmem:[#allocation7 + $0x190] sm:$0xff]  ;;  %v2513_v26 = vld [vmem:[#allocation7 + $0x168] sm:$0xff]  ;;  %p2362_p0 = por %p2361_p13, %p2360_p12 }
  0x48   :  { %339 = vmatprep.subr.mxu0 %v2478_v14  ;;  %410 = vmatprep.subr.mxu1 %v2480_v15  ;;  %v2515_v27 = vld [vmem:[#allocation7 + $0x178] sm:$0xff]  ;;  %v2519_v28 = vld [vmem:[#allocation7 + $0x160] sm:$0xff]  ;;  %v2521_v29 = vld [vmem:[#allocation7 + $0x170] sm:$0xff] }
  0x49   :  { %340 = vmatpush1.msra.mxu0 %v2483_v16  ;;  %411 = vmatpush1.msra.mxu1 %v2485_v17  ;;  %v2525_v30 = vld [vmem:[#allocation7 + $0x148] sm:$0xff]  ;;  %v2527_v31 = vld [vmem:[#allocation7 + $0x158] sm:$0xff]  ;;  %v2531_v32 = vld [vmem:[#allocation7 + $0x140] sm:$0xff]  ;;  %p2363_p1 = pnand %p2362_p0, %p2356_p11 }
  0x4a   :  { %341 = vmatprep.subr.mxu0 %v2489_v18  ;;  %412 = vmatprep.subr.mxu1 %v2491_v19  ;;  %v2533_v33 = vld [vmem:[#allocation7 + $0x150] sm:$0xff]  ;;  %v2537_v34 = vld [vmem:[#allocation7 + $0x128] sm:$0xff]  ;;  %v2539_v35 = vld [vmem:[#allocation7 + $0x138] sm:$0xff] }
  0x4b   :  { %342 = vmatpush1.msra.mxu0 %v2495_v20  ;;  %413 = vmatpush1.msra.mxu1 %v2497_v21  ;;  %v2543_v36 = vld [vmem:[#allocation7 + $0x120] sm:$0xff]  ;;  %v2545_v37 = vld [vmem:[#allocation7 + $0x130] sm:$0xff]  ;;  %v2549_v38 = vld [vmem:[#allocation7 + $0x108] sm:$0xff] }
  0x4c   :  { %343 = vmatprep.subr.mxu0 %v2501_v22  ;;  %414 = vmatprep.subr.mxu1 %v2503_v23  ;;  %v2551_v39 = vld [vmem:[#allocation7 + $0x118] sm:$0xff]  ;;  %v2555_v40 = vld [vmem:[#allocation7 + $0x100] sm:$0xff]  ;;  %v2557_v41 = vld [vmem:[#allocation7 + $0x110] sm:$0xff] }
  0x4d   :  { %344 = vmatpush1.msra.mxu0 %v2507_v24  ;;  %415 = vmatpush1.msra.mxu1 %v2509_v25  ;;  %v2561_v42 = vld [vmem:[#allocation7 + $0xe8] sm:$0xff]  ;;  %v2563_v43 = vld [vmem:[#allocation7 + $0xf8] sm:$0xff]  ;;  %v2567_v44 = vld [vmem:[#allocation7 + $0xe0] sm:$0xff] }
  0x4e   :  { %345 = vmatprep.subr.mxu0 %v2513_v26  ;;  %416 = vmatprep.subr.mxu1 %v2515_v27  ;;  %v2569_v45 = vld [vmem:[#allocation7 + $0xf0] sm:$0xff]  ;;  %v2573_v46 = vld [vmem:[#allocation7 + $0xc8] sm:$0xff]  ;;  %v2575_v47 = vld [vmem:[#allocation7 + $0xd8] sm:$0xff] }
  0x4f   :  { %346 = vmatpush1.msra.mxu0 %v2519_v28  ;;  %417 = vmatpush1.msra.mxu1 %v2521_v29  ;;  %v2579_v48 = vld [vmem:[#allocation7 + $0xc0] sm:$0xff]  ;;  %v2581_v49 = vld [vmem:[#allocation7 + $0xd0] sm:$0xff]  ;;  %v2585_v50 = vld [vmem:[#allocation7 + $0xa8] sm:$0xff] }
  0x50   :  { %347 = vmatprep.subr.mxu0 %v2525_v30  ;;  %418 = vmatprep.subr.mxu1 %v2527_v31  ;;  %v2587_v51 = vld [vmem:[#allocation7 + $0xb8] sm:$0xff]  ;;  %v2591_v52 = vld [vmem:[#allocation7 + $0xa0] sm:$0xff]  ;;  %v2593_v53 = vld [vmem:[#allocation7 + $0xb0] sm:$0xff] }
  0x51   :  { %348 = vmatpush1.msra.mxu0 %v2531_v32  ;;  %419 = vmatpush1.msra.mxu1 %v2533_v33  ;;  %3504 = vst [vmem:[#allocation18_spill] sm:$0xff] %v2593_v53  ;;  %v2597_v54 = vld [vmem:[#allocation7 + $0x88] sm:$0xff]  ;;  %v2599_v55 = vld [vmem:[#allocation7 + $0x98] sm:$0xff]  ;;  %v2603_v56 = vld [vmem:[#allocation7 + $0x80] sm:$0xff] }
  0x52   :  { %349 = vmatprep.subr.mxu0 %v2537_v34  ;;  %420 = vmatprep.subr.mxu1 %v2539_v35  ;;  %3505 = vst [vmem:[#allocation19_spill] sm:$0xff] %v2597_v54  ;;  %3506 = vst [vmem:[#allocation20_spill] sm:$0xff] %v2599_v55  ;;  %v2605_v57 = vld [vmem:[#allocation7 + $0x90] sm:$0xff]  ;;  %v2609_v58 = vld [vmem:[#allocation7 + $0x68] sm:$0xff] }
  0x53   :  { %350 = vmatpush1.msra.mxu0 %v2543_v36  ;;  %421 = vmatpush1.msra.mxu1 %v2545_v37  ;;  %3507 = vst [vmem:[#allocation21_spill] sm:$0xff] %v2603_v56  ;;  %3508 = vst [vmem:[#allocation22_spill] sm:$0xff] %v2605_v57  ;;  %v2611_v59 = vld [vmem:[#allocation7 + $0x78] sm:$0xff]  ;;  %v2615_v60 = vld [vmem:[#allocation7 + $0x60] sm:$0xff] }
  0x54   :  { %351 = vmatprep.subr.mxu0 %v2549_v38  ;;  %422 = vmatprep.subr.mxu1 %v2551_v39  ;;  %3509 = vst [vmem:[#allocation23_spill] sm:$0xff] %v2609_v58  ;;  %3510 = vst [vmem:[#allocation24_spill] sm:$0xff] %v2611_v59  ;;  %v2617_v61 = vld [vmem:[#allocation7 + $0x70] sm:$0xff]  ;;  %v2621_v62 = vld [vmem:[#allocation7 + $0x48] sm:$0xff] }
  0x55   :  { %352 = vmatpush1.msra.mxu0 %v2555_v40  ;;  %423 = vmatpush1.msra.mxu1 %v2557_v41  ;;  %3511 = vst [vmem:[#allocation25_spill] sm:$0xff] %v2615_v60  ;;  %3512 = vst [vmem:[#allocation26_spill] sm:$0xff] %v2617_v61  ;;  %v2623_v63 = vld [vmem:[#allocation7 + $0x58] sm:$0xff]  ;;  %v2627_v1 = vld [vmem:[#allocation7 + $0x40] sm:$0xff] }
  0x56   :  { %353 = vmatprep.subr.mxu0 %v2561_v42  ;;  %424 = vmatprep.subr.mxu1 %v2563_v43  ;;  %3513 = vst [vmem:[#allocation27_spill] sm:$0xff] %v2621_v62  ;;  %3514 = vst [vmem:[#allocation28_spill] sm:$0xff] %v2623_v63  ;;  %v2629_v2 = vld [vmem:[#allocation7 + $0x50] sm:$0xff]  ;;  %v2633_v3 = vld [vmem:[#allocation7 + $0x28] sm:$0xff] }
  0x57   :  { %354 = vmatpush1.msra.mxu0 %v2567_v44  ;;  %425 = vmatpush1.msra.mxu1 %v2569_v45  ;;  %3515 = vst [vmem:[#allocation29_spill] sm:$0xff] %v2627_v1  ;;  %3516 = vst [vmem:[#allocation30_spill] sm:$0xff] %v2629_v2  ;;  %v2635_v4 = vld [vmem:[#allocation7 + $0x38] sm:$0xff]  ;;  %v2639_v5 = vld [vmem:[#allocation7 + $0x20] sm:$0xff] }
  0x58   :  { %355 = vmatprep.subr.mxu0 %v2573_v46  ;;  %426 = vmatprep.subr.mxu1 %v2575_v47  ;;  %3517 = vst [vmem:[#allocation31_spill] sm:$0xff] %v2633_v3  ;;  %3518 = vst [vmem:[#allocation32_spill] sm:$0xff] %v2635_v4  ;;  %v2641_v6 = vld [vmem:[#allocation7 + $0x30] sm:$0xff]  ;;  %v2645_v7 = vld [vmem:[#allocation7 + $0x8] sm:$0xff] }
  0x59   :  { %356 = vmatpush1.msra.mxu0 %v2579_v48  ;;  %427 = vmatpush1.msra.mxu1 %v2581_v49  ;;  %3519 = vst [vmem:[#allocation33_spill] sm:$0xff] %v2639_v5  ;;  %3520 = vst [vmem:[#allocation34_spill] sm:$0xff] %v2641_v6  ;;  %v2647_v8 = vld [vmem:[#allocation7 + $0x18] sm:$0xff]  ;;  %v2651_v9 = vld [vmem:[#allocation7] sm:$0xff] }
  0x5a   :  { %357 = vmatprep.subr.mxu0 %v2585_v50  ;;  %428 = vmatprep.subr.mxu1 %v2587_v51  ;;  %3521 = vst [vmem:[#allocation35_spill] sm:$0xff] %v2645_v7  ;;  %3522 = vst [vmem:[#allocation36_spill] sm:$0xff] %v2647_v8  ;;  %v2655_v0 = vld [vmem:[#allocation7 + $0x10] sm:$0xff] }
  0x5b   :  { %358 = vmatpush1.msra.mxu0 %v2591_v52  ;;  %429 = vmatpush1.msra.mxu1 %v2593_v53  ;;  %3523 = vst [vmem:[#allocation37_spill] sm:$0xff] %v2651_v9  ;;  %3524 = vst [vmem:[#allocation38_spill] sm:$0xff] %v2655_v0 }
  0x5c   :  { %359 = vmatprep.subr.mxu0 %v2597_v54  ;;  %430 = vmatprep.subr.mxu1 %v2599_v55 }
  0x5d   :  { %360 = vmatpush1.msra.mxu0 %v2603_v56  ;;  %431 = vmatpush1.msra.mxu1 %v2605_v57 }
  0x5e   :  { %361 = vmatprep.subr.mxu0 %v2609_v58  ;;  %432 = vmatprep.subr.mxu1 %v2611_v59 }
  0x5f   :  { %362 = vmatpush1.msra.mxu0 %v2615_v60  ;;  %433 = vmatpush1.msra.mxu1 %v2617_v61 }
  0x60   :  { %363 = vmatprep.subr.mxu0 %v2621_v62  ;;  %434 = vmatprep.subr.mxu1 %v2623_v63 }
  0x61   :  { %364 = vmatpush1.msra.mxu0 %v2627_v1  ;;  %435 = vmatpush1.msra.mxu1 %v2629_v2  ;;  %v3525_v2 = vmov 0.0  }
  0x62   :  { %365 = vmatprep.subr.mxu0 %v2633_v3  ;;  %436 = vmatprep.subr.mxu1 %v2635_v4 }
  0x63   :  { %366 = vmatpush1.msra.mxu0 %v2639_v5  ;;  %437 = vmatpush1.msra.mxu1 %v2641_v6 }
  0x64   :  { %367 = vmatprep.subr.mxu0 %v2645_v7  ;;  %438 = vmatprep.subr.mxu1 %v2647_v8 }
  0x65   :  { %368 = vmatpush1.msra.mxu0 %v2651_v9  ;;  %401 = vmatprep.mubr.f32.mxu0 %v3525_v2 }
  0x66   :  { %439 = vmatpush1.msra.mxu1 %v2655_v0  ;;  %472 = vmatprep.mubr.f32.mxu1 %v3525_v2 }
  0x67   :  { %402 = vmatmul.mubr.f32.vlgmr.msra.gmra.mxu0 %v3525_v2  ;;  %473 = vmatmul.mubr.f32.vlgmr.msra.gmra.mxu1 %v3525_v2 }
  0x68   :  { %501 = vmatprep.subr.mxu0 %v2469_v10  ;;  %572 = vmatprep.subr.mxu1 %v2471_v11 }
  0x69   :  { %502 = vmatpush1.msra.mxu0 %v2473_v12  ;;  %573 = vmatpush1.msra.mxu1 %v2475_v13 }
  0x6a   :  { %503 = vmatprep.subr.mxu0 %v2478_v14  ;;  %574 = vmatprep.subr.mxu1 %v2480_v15 }
  0x6b   :  { %504 = vmatpush1.msra.mxu0 %v2483_v16  ;;  %575 = vmatpush1.msra.mxu1 %v2485_v17 }
  0x6c   :  { %505 = vmatprep.subr.mxu0 %v2489_v18  ;;  %576 = vmatprep.subr.mxu1 %v2491_v19 }
  0x6d   :  { %506 = vmatpush1.msra.mxu0 %v2495_v20  ;;  %577 = vmatpush1.msra.mxu1 %v2497_v21 }
  0x6e   :  { %507 = vmatprep.subr.mxu0 %v2501_v22  ;;  %578 = vmatprep.subr.mxu1 %v2503_v23 }
  0x6f   :  { %508 = vmatpush1.msra.mxu0 %v2507_v24  ;;  %579 = vmatpush1.msra.mxu1 %v2509_v25 }
  0x70   :  { %509 = vmatprep.subr.mxu0 %v2513_v26  ;;  %580 = vmatprep.subr.mxu1 %v2515_v27 }
  0x71   :  { %510 = vmatpush1.msra.mxu0 %v2519_v28  ;;  %581 = vmatpush1.msra.mxu1 %v2521_v29 }
  0x72   :  { %511 = vmatprep.subr.mxu0 %v2525_v30  ;;  %582 = vmatprep.subr.mxu1 %v2527_v31 }
  0x73   :  { %512 = vmatpush1.msra.mxu0 %v2531_v32  ;;  %583 = vmatpush1.msra.mxu1 %v2533_v33 }
  0x74   :  { %513 = vmatprep.subr.mxu0 %v2537_v34  ;;  %584 = vmatprep.subr.mxu1 %v2539_v35 }
  0x75   :  { %514 = vmatpush1.msra.mxu0 %v2543_v36  ;;  %585 = vmatpush1.msra.mxu1 %v2545_v37 }
  0x76   :  { %515 = vmatprep.subr.mxu0 %v2549_v38  ;;  %586 = vmatprep.subr.mxu1 %v2551_v39 }
  0x77   :  { %516 = vmatpush1.msra.mxu0 %v2555_v40  ;;  %587 = vmatpush1.msra.mxu1 %v2557_v41 }
  0x78   :  { %517 = vmatprep.subr.mxu0 %v2561_v42  ;;  %588 = vmatprep.subr.mxu1 %v2563_v43 }
  0x79   :  { %518 = vmatpush1.msra.mxu0 %v2567_v44  ;;  %589 = vmatpush1.msra.mxu1 %v2569_v45 }
  0x7a   :  { %519 = vmatprep.subr.mxu0 %v2573_v46  ;;  %590 = vmatprep.subr.mxu1 %v2575_v47 }
  0x7b   :  { %520 = vmatpush1.msra.mxu0 %v2579_v48  ;;  %591 = vmatpush1.msra.mxu1 %v2581_v49 }
  0x7c   :  { %521 = vmatprep.subr.mxu0 %v2585_v50  ;;  %592 = vmatprep.subr.mxu1 %v2587_v51 }
  0x7d   :  { %522 = vmatpush1.msra.mxu0 %v2591_v52  ;;  %593 = vmatpush1.msra.mxu1 %v2593_v53 }
  0x7e   :  { %523 = vmatprep.subr.mxu0 %v2597_v54  ;;  %594 = vmatprep.subr.mxu1 %v2599_v55  ;;  %v3526_v54 = vld [vmem:[#allocation30_spill] sm:$0xff] }
  0x7f   :  { %524 = vmatpush1.msra.mxu0 %v2603_v56  ;;  %595 = vmatpush1.msra.mxu1 %v2605_v57 }
  0x80   :  { %525 = vmatprep.subr.mxu0 %v2609_v58  ;;  %596 = vmatprep.subr.mxu1 %v2611_v59 }
  0x81   :  { %526 = vmatpush1.msra.mxu0 %v2615_v60  ;;  %597 = vmatpush1.msra.mxu1 %v2617_v61 }
  0x82   :  { %527 = vmatprep.subr.mxu0 %v2621_v62  ;;  %598 = vmatprep.subr.mxu1 %v2623_v63 }
  0x83   :  { %528 = vmatpush1.msra.mxu0 %v2627_v1  ;;  %599 = vmatpush1.msra.mxu1 %v3526_v54 }
  0x84   :  { %529 = vmatprep.subr.mxu0 %v2633_v3  ;;  %600 = vmatprep.subr.mxu1 %v2635_v4  ;;  %v171_v4 = vlaneseq }
  0x85   :  { %530 = vmatpush1.msra.mxu0 %v2639_v5  ;;  %601 = vmatpush1.msra.mxu1 %v2641_v6 }
  0x86   :  { %531 = vmatprep.subr.mxu0 %v2645_v7  ;;  %602 = vmatprep.subr.mxu1 %v2647_v8  ;;  %v172_v5 = vshrl.u32 %v171_v4, 7  ;;  %v168_v7 = vld [vmem:[%s3396_s3] sm:$0xf] }
  0x87   :  { %532 = vmatpush1.msra.mxu0 %v2651_v9  ;;  %565 = vmatprep.mubr.f32.mxu0 %v3525_v2 }
  0x88   :  { %603 = vmatpush1.msra.mxu1 %v2655_v0  ;;  %636 = vmatprep.mubr.f32.mxu1 %v3525_v2  ;;  %v173_v3 = vsub.s32 0, %v172_v5  ;;  %v177_v8 = vsub.s32 1, %v172_v5  ;;  %v181_v1 = vsub.s32 2, %v172_v5  ;;  %v185_v59 = vsub.s32 3, %v172_v5 }
  0x89   :  { %683 = vmatprep.subr.mxu0 %v2469_v10  ;;  %754 = vmatprep.subr.mxu1 %v2471_v11 }
  0x8a   :  { %v174_v9 = vrot.slane %v168_v7, %v173_v3  ;;  %v178_v54 = vrot.slane %v168_v7, %v177_v8  ;;  %v182_v11 = vrot.slane %v168_v7, %v181_v1  ;;  %v186_v55 = vrot.slane %v168_v7, %v185_v59 }
 0x105   :  { %v261_v6 = vpop.f32.mrf.mxu0 }
 0x106   :  { %v332_v0 = vpop.f32.mrf.mxu1  ;;  %v2736_v62 = vadd.f32 %v261_v6, %v174_v9 }
 0x107   :  { %v263_v63 = vpop.f32.mrf.mxu0  ;;  %v2742_v3 = vadd.f32 %v332_v0, %v182_v11 }
 0x108   :  { %v2738_v10 = vadd.f32 %v263_v63, %v178_v54  ;;  %v334_v61 = vpop.f32.mrf.mxu1 }
 0x109   :  { %v2745_v63 = vadd.f32 %v334_v61, %v186_v55 }
 0x10a   :  { %3527 = vst [vmem:[#allocation39_spill] sm:$0xff] %v2738_v10 }
 0x127   :  { %v403_v2 = vpop.f32.mrf.mxu0  ;;  %v474_v56 = vpop.f32.mrf.mxu1 }
 0x128   :  { %v479_v4 = vadd.f32 %v403_v2, %v2736_v62  ;;  %v481_v6 = vadd.f32 %v474_v56, %v2742_v3 }
 0x129   :  { %v405_v60 = vpop.f32.mrf.mxu0  ;;  %v476_v54 = vpop.f32.mrf.mxu1 }
 0x12a   :  { %v483_v58 = vmul.f32 0.5, %v479_v4  ;;  %v480_v57 = vadd.f32 %v405_v60, %v2738_v10  ;;  %v482_v1 = vadd.f32 %v476_v54, %v2745_v63  ;;  %v3531_v54 = vld [vmem:[#allocation21_spill] sm:$0xff] }
 0x12c   :  { %2111 = vtanh.f32 %v483_v58  ;;  %v487_v8 = vmul.f32 0.5, %v480_v57  ;;  %v492_v2 = vmul.f32 0.5, %v482_v1  ;;  %v3532_v1 = vld [vmem:[#allocation22_spill] sm:$0xff] }
 0x12e   :  { %2113 = vtanh.f32 %v487_v8 }
 0x12f   :  { %2115 = vtanh.f32 %v481_v6  ;;  %v3530_v6 = vld [vmem:[#allocation20_spill] sm:$0xff] }
 0x130   :  { %2117 = vtanh.f32 %v492_v2  ;;  %v3533_v2 = vld [vmem:[#allocation23_spill] sm:$0xff] }
 0x139   :  { %v2112_v5 = vpop.eup %2111 }
 0x13a   :  { %v485_v9 = vmul.f32 0.5, %v2112_v5  ;;  %v3534_v5 = vld [vmem:[#allocation24_spill] sm:$0xff] }
 0x13b   :  { %v2114_v4 = vpop.eup %2113 }
 0x13c   :  { %v486_v60 = vadd.f32 0.5, %v485_v9  ;;  %v489_v10 = vmul.f32 0.5, %v2114_v4  ;;  %v2116_v11 = vpop.eup %2115  ;;  %v3535_v9 = vld [vmem:[#allocation25_spill] sm:$0xff]  ;;  %v3536_v4 = vld [vmem:[#allocation26_spill] sm:$0xff] }
 0x13d   :  { %v2118_v55 = vpop.eup %2117 }
 0x13e   :  { %v490_v0 = vadd.f32 0.5, %v489_v10  ;;  %v497_v58 = vmul.f32 %v2116_v11, %v486_v60  ;;  %v494_v56 = vmul.f32 0.5, %v2118_v55  ;;  %v3529_v10 = vld [vmem:[#allocation19_spill] sm:$0xff]  ;;  %v3539_v11 = vld [vmem:[#allocation29_spill] sm:$0xff]  ;;  %v3542_v55 = vld [vmem:[#allocation32_spill] sm:$0xff] }
 0x13f   :  { %v3537_v60 = vld [vmem:[#allocation27_spill] sm:$0xff] }
 0x140   :  { %v496_v57 = vmul.f32 0.0, %v490_v0  ;;  %v495_v61 = vadd.f32 0.5, %v494_v56  ;;  %v3538_v0 = vld [vmem:[#allocation28_spill] sm:$0xff]  ;;  %v3543_v56 = vld [vmem:[#allocation33_spill] sm:$0xff] }
 0x142   :  { %v2748_v59 = vadd.f32 %v497_v58, %v496_v57  ;;  %v3540_v57 = vld [vmem:[#allocation30_spill] sm:$0xff]  ;;  %v3541_v58 = vld [vmem:[#allocation31_spill] sm:$0xff] }
 0x144   :  { %2119 = vtanh.f32 %v2748_v59 }
 0x151   :  { %v2120_v7 = vpop.eup %2119 }
 0x152   :  { %v2751_v8 = vmul.f32 %v2120_v7, %v495_v61  ;;  %v3544_v61 = vld [vmem:[#allocation34_spill] sm:$0xff]  ;;  %v3545_v7 = vld [vmem:[#allocation35_spill] sm:$0xff] }
 0x154   :  { %3528 = vst [vmem:[#allocation40_spill] sm:$0xff] %v2751_v8  ;;  %566 = vmatmul.mubr.f32.vlgmr.msra.gmra.mxu0 %v2751_v8  ;;  %637 = vmatmul.mubr.f32.vlgmr.msra.gmra.mxu1 %v2751_v8  ;;  %v3546_v8 = vld [vmem:[#allocation36_spill] sm:$0xff] }
 0x155   :  { %684 = vmatpush1.msra.mxu0 %v2473_v12  ;;  %755 = vmatpush1.msra.mxu1 %v2475_v13 }
 0x156   :  { %685 = vmatprep.subr.mxu0 %v2478_v14  ;;  %756 = vmatprep.subr.mxu1 %v2480_v15 }
 0x157   :  { %686 = vmatpush1.msra.mxu0 %v2483_v16  ;;  %757 = vmatpush1.msra.mxu1 %v2485_v17 }
 0x158   :  { %687 = vmatprep.subr.mxu0 %v2489_v18  ;;  %758 = vmatprep.subr.mxu1 %v2491_v19 }
 0x159   :  { %688 = vmatpush1.msra.mxu0 %v2495_v20  ;;  %759 = vmatpush1.msra.mxu1 %v2497_v21 }
 0x15a   :  { %689 = vmatprep.subr.mxu0 %v2501_v22  ;;  %760 = vmatprep.subr.mxu1 %v2503_v23 }
 0x15b   :  { %690 = vmatpush1.msra.mxu0 %v2507_v24  ;;  %761 = vmatpush1.msra.mxu1 %v2509_v25 }
 0x15c   :  { %691 = vmatprep.subr.mxu0 %v2513_v26  ;;  %762 = vmatprep.subr.mxu1 %v2515_v27 }
 0x15d   :  { %692 = vmatpush1.msra.mxu0 %v2519_v28  ;;  %763 = vmatpush1.msra.mxu1 %v2521_v29 }
 0x15e   :  { %693 = vmatprep.subr.mxu0 %v2525_v30  ;;  %764 = vmatprep.subr.mxu1 %v2527_v31 }
 0x15f   :  { %694 = vmatpush1.msra.mxu0 %v2531_v32  ;;  %765 = vmatpush1.msra.mxu1 %v2533_v33 }
 0x160   :  { %695 = vmatprep.subr.mxu0 %v2537_v34  ;;  %766 = vmatprep.subr.mxu1 %v2539_v35 }
 0x161   :  { %696 = vmatpush1.msra.mxu0 %v2543_v36  ;;  %767 = vmatpush1.msra.mxu1 %v2545_v37 }
 0x162   :  { %697 = vmatprep.subr.mxu0 %v2549_v38  ;;  %768 = vmatprep.subr.mxu1 %v2551_v39 }
 0x163   :  { %698 = vmatpush1.msra.mxu0 %v2555_v40  ;;  %769 = vmatpush1.msra.mxu1 %v2557_v41 }
 0x164   :  { %699 = vmatprep.subr.mxu0 %v2561_v42  ;;  %770 = vmatprep.subr.mxu1 %v2563_v43 }
 0x165   :  { %700 = vmatpush1.msra.mxu0 %v2567_v44  ;;  %771 = vmatpush1.msra.mxu1 %v2569_v45 }
 0x166   :  { %701 = vmatprep.subr.mxu0 %v2573_v46  ;;  %772 = vmatprep.subr.mxu1 %v2575_v47 }
 0x167   :  { %702 = vmatpush1.msra.mxu0 %v2579_v48  ;;  %773 = vmatpush1.msra.mxu1 %v2581_v49 }
 0x168   :  { %703 = vmatprep.subr.mxu0 %v2585_v50  ;;  %774 = vmatprep.subr.mxu1 %v2587_v51 }
 0x169   :  { %704 = vmatpush1.msra.mxu0 %v2591_v52  ;;  %775 = vmatpush1.msra.mxu1 %v2593_v53 }
 0x16a   :  { %705 = vmatprep.subr.mxu0 %v3529_v10  ;;  %776 = vmatprep.subr.mxu1 %v3530_v6 }
 0x16b   :  { %706 = vmatpush1.msra.mxu0 %v3531_v54  ;;  %777 = vmatpush1.msra.mxu1 %v3532_v1 }
 0x16c   :  { %707 = vmatprep.subr.mxu0 %v3533_v2  ;;  %778 = vmatprep.subr.mxu1 %v3534_v5 }
 0x16d   :  { %708 = vmatpush1.msra.mxu0 %v3535_v9  ;;  %779 = vmatpush1.msra.mxu1 %v3536_v4  ;;  %v3547_v4 = vld [vmem:[#allocation37_spill] sm:$0xff] }
 0x16e   :  { %709 = vmatprep.subr.mxu0 %v3537_v60  ;;  %780 = vmatprep.subr.mxu1 %v3538_v0  ;;  %v3548_v60 = vmov 0.0   ;;  %v3549_v0 = vld [vmem:[#allocation38_spill] sm:$0xff] }
 0x16f   :  { %710 = vmatpush1.msra.mxu0 %v3539_v11  ;;  %781 = vmatpush1.msra.mxu1 %v3540_v57  ;;  %v3550_v57 = vld [vmem:[#allocation16_spill] sm:$0xff] }
 0x170   :  { %711 = vmatprep.subr.mxu0 %v3541_v58  ;;  %782 = vmatprep.subr.mxu1 %v3542_v55  ;;  %v3551_v58 = vld [vmem:[#allocation17_spill] sm:$0xff] }
 0x171   :  { %712 = vmatpush1.msra.mxu0 %v3543_v56  ;;  %783 = vmatpush1.msra.mxu1 %v3544_v61 }
 0x172   :  { %713 = vmatprep.subr.mxu0 %v3545_v7  ;;  %784 = vmatprep.subr.mxu1 %v3546_v8 }
 0x173   :  { %714 = vmatpush1.msra.mxu0 %v3547_v4  ;;  %747 = vmatprep.mubr.f32.mxu0 %v3548_v60  ;;  %v3552_v4 = vld [vmem:[#allocation39_spill] sm:$0xff] }
 0x174   :  { %785 = vmatpush1.msra.mxu1 %v3549_v0  ;;  %818 = vmatprep.mubr.f32.mxu1 %v3548_v60 }
 0x175   :  { %865 = vmatprep.subr.mxu0 %v3550_v57  ;;  %936 = vmatprep.subr.mxu1 %v3551_v58 }
 0x214   :  { %v567_v55 = vpop.f32.mrf.mxu0  ;;  %v638_v11 = vpop.f32.mrf.mxu1 }
 0x215   :  { %v647_v56 = vrot.slane %v567_v55, 7  ;;  %v649_v5 = vrot.slane %v638_v11, 7  ;;  %v673_v11 = vrot.slane %v2748_v59, 7  ;;  %v3553_v59 = vld [vmem:[#allocation19_spill] sm:$0xff] }
 0x216   :  { %v569_v61 = vpop.f32.mrf.mxu0  ;;  %v640_v0 = vpop.f32.mrf.mxu1 }
 0x217   :  { %v655_v7 = vadd.f32 %v647_v56, %v2736_v62  ;;  %v648_v9 = vrot.slane %v569_v61, 7  ;;  %v657_v60 = vadd.f32 %v649_v5, %v2742_v3  ;;  %v650_v57 = vrot.slane %v640_v0, 7 }
 0x219   :  { %v659_v8 = vmul.f32 0.5, %v655_v7  ;;  %v656_v2 = vadd.f32 %v648_v9, %v3552_v4  ;;  %v658_v58 = vadd.f32 %v650_v57, %v2745_v63 }
 0x21b   :  { %2121 = vtanh.f32 %v659_v8  ;;  %v663_v1 = vmul.f32 0.5, %v656_v2  ;;  %v668_v55 = vmul.f32 0.5, %v658_v58  ;;  %v3556_v58 = vld [vmem:[#allocation22_spill] sm:$0xff] }
 0x21d   :  { %2123 = vtanh.f32 %v663_v1 }
 0x21e   :  { %2125 = vtanh.f32 %v657_v60 }
 0x21f   :  { %2127 = vtanh.f32 %v668_v55  ;;  %v3557_v55 = vld [vmem:[#allocation23_spill] sm:$0xff] }
 0x228   :  { %v2122_v54 = vpop.eup %2121 }
 0x229   :  { %v661_v6 = vmul.f32 0.5, %v2122_v54  ;;  %v3555_v54 = vld [vmem:[#allocation21_spill] sm:$0xff] }
 0x22a   :  { %v2124_v10 = vpop.eup %2123 }
 0x22b   :  { %v662_v56 = vadd.f32 0.5, %v661_v6  ;;  %v665_v61 = vmul.f32 0.5, %v2124_v10  ;;  %v2126_v8 = vpop.eup %2125  ;;  %v3554_v10 = vld [vmem:[#allocation20_spill] sm:$0xff] }
 0x22c   :  { %v2128_v1 = vpop.eup %2127 }
 0x22d   :  { %v666_v9 = vadd.f32 0.5, %v665_v61  ;;  %v676_v7 = vmul.f32 %v2126_v8, %v662_v56  ;;  %v670_v5 = vmul.f32 0.5, %v2128_v1  ;;  %v3558_v56 = vld [vmem:[#allocation24_spill] sm:$0xff]  ;;  %v3559_v61 = vld [vmem:[#allocation25_spill] sm:$0xff]  ;;  %v3565_v1 = vld [vmem:[#allocation31_spill] sm:$0xff] }
 0x22e   :  { %v3562_v8 = vld [vmem:[#allocation28_spill] sm:$0xff] }
 0x22f   :  { %v675_v2 = vmul.f32 %v673_v11, %v666_v9  ;;  %v671_v60 = vadd.f32 0.5, %v670_v5  ;;  %v3560_v11 = vld [vmem:[#allocation26_spill] sm:$0xff]  ;;  %v3561_v9 = vld [vmem:[#allocation27_spill] sm:$0xff]  ;;  %v3566_v5 = vld [vmem:[#allocation32_spill] sm:$0xff] }
 0x231   :  { %v2826_v4 = vadd.f32 %v676_v7, %v675_v2  ;;  %v3563_v2 = vld [vmem:[#allocation29_spill] sm:$0xff]  ;;  %v3564_v7 = vld [vmem:[#allocation30_spill] sm:$0xff] }
 0x233   :  { %2129 = vtanh.f32 %v2826_v4 }
 0x240   :  { %v2130_v0 = vpop.eup %2129 }
 0x241   :  { %v2829_v57 = vmul.f32 %v2130_v0, %v671_v60  ;;  %v3567_v60 = vld [vmem:[#allocation33_spill] sm:$0xff]  ;;  %v3568_v0 = vld [vmem:[#allocation34_spill] sm:$0xff] }
 0x243   :  { %v681_v6 = vrot.slane %v2829_v57, 1 }
 0x245   :  { %748 = vmatmul.mubr.f32.vlgmr.msra.gmra.mxu0 %v681_v6  ;;  %819 = vmatmul.mubr.f32.vlgmr.msra.gmra.mxu1 %v681_v6  ;;  %v3569_v6 = vld [vmem:[#allocation35_spill] sm:$0xff] }
 0x246   :  { %866 = vmatpush1.msra.mxu0 %v2473_v12  ;;  %937 = vmatpush1.msra.mxu1 %v2475_v13 }
 0x247   :  { %867 = vmatprep.subr.mxu0 %v2478_v14  ;;  %938 = vmatprep.subr.mxu1 %v2480_v15 }
 0x248   :  { %868 = vmatpush1.msra.mxu0 %v2483_v16  ;;  %939 = vmatpush1.msra.mxu1 %v2485_v17 }
 0x249   :  { %869 = vmatprep.subr.mxu0 %v2489_v18  ;;  %940 = vmatprep.subr.mxu1 %v2491_v19 }
 0x24a   :  { %870 = vmatpush1.msra.mxu0 %v2495_v20  ;;  %941 = vmatpush1.msra.mxu1 %v2497_v21 }
 0x24b   :  { %871 = vmatprep.subr.mxu0 %v2501_v22  ;;  %942 = vmatprep.subr.mxu1 %v2503_v23 }
 0x24c   :  { %872 = vmatpush1.msra.mxu0 %v2507_v24  ;;  %943 = vmatpush1.msra.mxu1 %v2509_v25 }
 0x24d   :  { %873 = vmatprep.subr.mxu0 %v2513_v26  ;;  %944 = vmatprep.subr.mxu1 %v2515_v27 }
 0x24e   :  { %874 = vmatpush1.msra.mxu0 %v2519_v28  ;;  %945 = vmatpush1.msra.mxu1 %v2521_v29 }
 0x24f   :  { %875 = vmatprep.subr.mxu0 %v2525_v30  ;;  %946 = vmatprep.subr.mxu1 %v2527_v31 }
 0x250   :  { %876 = vmatpush1.msra.mxu0 %v2531_v32  ;;  %947 = vmatpush1.msra.mxu1 %v2533_v33 }
 0x251   :  { %877 = vmatprep.subr.mxu0 %v2537_v34  ;;  %948 = vmatprep.subr.mxu1 %v2539_v35 }
 0x252   :  { %878 = vmatpush1.msra.mxu0 %v2543_v36  ;;  %949 = vmatpush1.msra.mxu1 %v2545_v37 }
 0x253   :  { %879 = vmatprep.subr.mxu0 %v2549_v38  ;;  %950 = vmatprep.subr.mxu1 %v2551_v39 }
 0x254   :  { %880 = vmatpush1.msra.mxu0 %v2555_v40  ;;  %951 = vmatpush1.msra.mxu1 %v2557_v41 }
 0x255   :  { %881 = vmatprep.subr.mxu0 %v2561_v42  ;;  %952 = vmatprep.subr.mxu1 %v2563_v43 }
 0x256   :  { %882 = vmatpush1.msra.mxu0 %v2567_v44  ;;  %953 = vmatpush1.msra.mxu1 %v2569_v45 }
 0x257   :  { %883 = vmatprep.subr.mxu0 %v2573_v46  ;;  %954 = vmatprep.subr.mxu1 %v2575_v47 }
 0x258   :  { %884 = vmatpush1.msra.mxu0 %v2579_v48  ;;  %955 = vmatpush1.msra.mxu1 %v2581_v49 }
 0x259   :  { %885 = vmatprep.subr.mxu0 %v2585_v50  ;;  %956 = vmatprep.subr.mxu1 %v2587_v51 }
 0x25a   :  { %886 = vmatpush1.msra.mxu0 %v2591_v52  ;;  %957 = vmatpush1.msra.mxu1 %v2593_v53 }
 0x25b   :  { %887 = vmatprep.subr.mxu0 %v3553_v59  ;;  %958 = vmatprep.subr.mxu1 %v3554_v10 }
 0x25c   :  { %888 = vmatpush1.msra.mxu0 %v3555_v54  ;;  %959 = vmatpush1.msra.mxu1 %v3556_v58 }
 0x25d   :  { %889 = vmatprep.subr.mxu0 %v3557_v55  ;;  %960 = vmatprep.subr.mxu1 %v3558_v56 }
 0x25e   :  { %890 = vmatpush1.msra.mxu0 %v3559_v61  ;;  %961 = vmatpush1.msra.mxu1 %v3560_v11  ;;  %v3570_v61 = vld [vmem:[#allocation36_spill] sm:$0xff]  ;;  %v3571_v11 = vld [vmem:[#allocation37_spill] sm:$0xff] }
 0x25f   :  { %891 = vmatprep.subr.mxu0 %v3561_v9  ;;  %962 = vmatprep.subr.mxu1 %v3562_v8  ;;  %v3572_v9 = vmov 0.0   ;;  %v3573_v8 = vld [vmem:[#allocation38_spill] sm:$0xff] }
 0x260   :  { %892 = vmatpush1.msra.mxu0 %v3563_v2  ;;  %963 = vmatpush1.msra.mxu1 %v3564_v7  ;;  %v3574_v7 = vld [vmem:[#allocation16_spill] sm:$0xff] }
 0x261   :  { %893 = vmatprep.subr.mxu0 %v3565_v1  ;;  %964 = vmatprep.subr.mxu1 %v3566_v5  ;;  %v3575_v1 = vld [vmem:[#allocation17_spill] sm:$0xff] }
 0x262   :  { %894 = vmatpush1.msra.mxu0 %v3567_v60  ;;  %965 = vmatpush1.msra.mxu1 %v3568_v0 }
 0x263   :  { %895 = vmatprep.subr.mxu0 %v3569_v6  ;;  %966 = vmatprep.subr.mxu1 %v3570_v61 }
 0x264   :  { %896 = vmatpush1.msra.mxu0 %v3571_v11  ;;  %929 = vmatprep.mubr.f32.mxu0 %v3572_v9  ;;  %v3576_v11 = vld [vmem:[#allocation39_spill] sm:$0xff] }
 0x265   :  { %967 = vmatpush1.msra.mxu1 %v3573_v8  ;;  %1000 = vmatprep.mubr.f32.mxu1 %v3572_v9 }
 0x266   :  { %1047 = vmatprep.subr.mxu0 %v3574_v7  ;;  %1118 = vmatprep.subr.mxu1 %v3575_v1 }
 0x305   :  { %v749_v5 = vpop.f32.mrf.mxu0  ;;  %v820_v2 = vpop.f32.mrf.mxu1 }
 0x306   :  { %v829_v60 = vrot.slane %v749_v5, 6  ;;  %v831_v55 = vrot.slane %v820_v2, 6 }
 0x307   :  { %v751_v0 = vpop.f32.mrf.mxu0  ;;  %v822_v8 = vpop.f32.mrf.mxu1 }
 0x308   :  { %v837_v6 = vadd.f32 %v829_v60, %v2736_v62  ;;  %v830_v56 = vrot.slane %v751_v0, 6  ;;  %v839_v9 = vadd.f32 %v831_v55, %v2742_v3  ;;  %v832_v7 = vrot.slane %v822_v8, 6 }
 0x30a   :  { %v841_v61 = vmul.f32 0.5, %v837_v6  ;;  %v838_v58 = vadd.f32 %v830_v56, %v3576_v11  ;;  %v840_v1 = vadd.f32 %v832_v7, %v2745_v63  ;;  %v855_v56 = vrot.slane %v2826_v4, 7 }
 0x30c   :  { %2131 = vtanh.f32 %v841_v61  ;;  %v845_v54 = vmul.f32 0.5, %v838_v58  ;;  %v850_v5 = vmul.f32 0.5, %v840_v1 }
 0x30e   :  { %2133 = vtanh.f32 %v845_v54 }
 0x30f   :  { %2135 = vtanh.f32 %v839_v9 }
 0x310   :  { %2137 = vtanh.f32 %v850_v5 }
 0x319   :  { %v2132_v10 = vpop.eup %2131 }
 0x31a   :  { %v843_v59 = vmul.f32 0.5, %v2132_v10 }
 0x31b   :  { %v2134_v53 = vpop.eup %2133 }
 0x31c   :  { %v844_v60 = vadd.f32 0.5, %v843_v59  ;;  %v847_v0 = vmul.f32 0.5, %v2134_v53  ;;  %v2136_v61 = vpop.eup %2135  ;;  %v3577_v53 = vld [vmem:[#allocation40_spill] sm:$0xff] }
 0x31d   :  { %v2138_v54 = vpop.eup %2137  ;;  %v1773_v59 = vsel %vm1772_vm1, %v3577_v53, %v2829_v57 }
 0x31e   :  { %v848_v2 = vadd.f32 0.5, %v847_v0  ;;  %v858_v6 = vmul.f32 %v2136_v61, %v844_v60  ;;  %v852_v55 = vmul.f32 0.5, %v2138_v54 }
 0x320   :  { %v857_v58 = vmul.f32 %v855_v56, %v848_v2  ;;  %v853_v9 = vadd.f32 0.5, %v852_v55 }
 0x322   :  { %v2903_v11 = vadd.f32 %v858_v6, %v857_v58 }
 0x324   :  { %2139 = vtanh.f32 %v2903_v11  ;;  %v1037_v2 = vrot.slane %v2903_v11, 7  ;;  %v2991_v11 = vld [vmem:[#allocation7 + $0x1e0] sm:$0xff] }
 0x331   :  { %v2140_v8 = vpop.eup %2139 }
 0x332   :  { %v861_v10 = vmul.f32 %v2140_v8, %v853_v9 }
 0x334   :  { %v863_v7 = vrot.slane %v861_v10, 2  ;;  %v2908_v1 = vsel %vm1774_vm2, %v1773_v59, %v861_v10 }
 0x336   :  { %930 = vmatmul.mubr.f32.vlgmr.msra.gmra.mxu0 %v863_v7  ;;  %1001 = vmatmul.mubr.f32.vlgmr.msra.gmra.mxu1 %v863_v7  ;;  %v2994_v7 = vld [vmem:[#allocation7 + $0x1f0] sm:$0xff] }
 0x337   :  { %1048 = vmatpush1.msra.mxu0 %v2473_v12  ;;  %1119 = vmatpush1.msra.mxu1 %v2475_v13  ;;  %v3578_v12 = vld [vmem:[#allocation18_spill] sm:$0xff]  ;;  %v3579_v13 = vld [vmem:[#allocation19_spill] sm:$0xff] }
 0x338   :  { %1049 = vmatprep.subr.mxu0 %v2478_v14  ;;  %1120 = vmatprep.subr.mxu1 %v2480_v15  ;;  %v3580_v14 = vld [vmem:[#allocation20_spill] sm:$0xff]  ;;  %v3581_v15 = vld [vmem:[#allocation21_spill] sm:$0xff] }
 0x339   :  { %1050 = vmatpush1.msra.mxu0 %v2483_v16  ;;  %1121 = vmatpush1.msra.mxu1 %v2485_v17  ;;  %v3582_v16 = vld [vmem:[#allocation22_spill] sm:$0xff]  ;;  %v3583_v17 = vld [vmem:[#allocation23_spill] sm:$0xff] }
 0x33a   :  { %1051 = vmatprep.subr.mxu0 %v2489_v18  ;;  %1122 = vmatprep.subr.mxu1 %v2491_v19  ;;  %v3584_v18 = vld [vmem:[#allocation24_spill] sm:$0xff]  ;;  %v3585_v19 = vld [vmem:[#allocation25_spill] sm:$0xff] }
 0x33b   :  { %1052 = vmatpush1.msra.mxu0 %v2495_v20  ;;  %1123 = vmatpush1.msra.mxu1 %v2497_v21  ;;  %v3586_v20 = vld [vmem:[#allocation26_spill] sm:$0xff]  ;;  %v3587_v21 = vld [vmem:[#allocation27_spill] sm:$0xff] }
 0x33c   :  { %1053 = vmatprep.subr.mxu0 %v2501_v22  ;;  %1124 = vmatprep.subr.mxu1 %v2503_v23  ;;  %v3588_v22 = vld [vmem:[#allocation28_spill] sm:$0xff]  ;;  %v3589_v23 = vld [vmem:[#allocation29_spill] sm:$0xff] }
 0x33d   :  { %1054 = vmatpush1.msra.mxu0 %v2507_v24  ;;  %1125 = vmatpush1.msra.mxu1 %v2509_v25  ;;  %v3590_v24 = vld [vmem:[#allocation30_spill] sm:$0xff]  ;;  %v3591_v25 = vld [vmem:[#allocation31_spill] sm:$0xff] }
 0x33e   :  { %1055 = vmatprep.subr.mxu0 %v2513_v26  ;;  %1126 = vmatprep.subr.mxu1 %v2515_v27  ;;  %v3592_v26 = vld [vmem:[#allocation32_spill] sm:$0xff]  ;;  %v3593_v27 = vld [vmem:[#allocation33_spill] sm:$0xff] }
 0x33f   :  { %1056 = vmatpush1.msra.mxu0 %v2519_v28  ;;  %1127 = vmatpush1.msra.mxu1 %v2521_v29  ;;  %v3594_v28 = vld [vmem:[#allocation34_spill] sm:$0xff]  ;;  %v3595_v29 = vld [vmem:[#allocation35_spill] sm:$0xff] }
 0x340   :  { %1057 = vmatprep.subr.mxu0 %v2525_v30  ;;  %1128 = vmatprep.subr.mxu1 %v2527_v31  ;;  %v3596_v30 = vld [vmem:[#allocation36_spill] sm:$0xff]  ;;  %v3597_v31 = vld [vmem:[#allocation37_spill] sm:$0xff] }
 0x341   :  { %1058 = vmatpush1.msra.mxu0 %v2531_v32  ;;  %1129 = vmatpush1.msra.mxu1 %v2533_v33  ;;  %v3598_v32 = vmov 0.0   ;;  %v3599_v33 = vld [vmem:[#allocation38_spill] sm:$0xff] }
 0x342   :  { %1059 = vmatprep.subr.mxu0 %v2537_v34  ;;  %1130 = vmatprep.subr.mxu1 %v2539_v35  ;;  %v2974_v34 = vld [vmem:[#allocation7 + $0x1e8] sm:$0xff]  ;;  %v2977_v35 = vld [vmem:[#allocation7 + $0x1f8] sm:$0xff] }
 0x343   :  { %1060 = vmatpush1.msra.mxu0 %v2543_v36  ;;  %1131 = vmatpush1.msra.mxu1 %v2545_v37  ;;  %3600 = vst [vmem:[#allocation16_spill] sm:$0xff] %v2974_v34  ;;  %3601 = vst [vmem:[#allocation17_spill] sm:$0xff] %v2977_v35 }
 0x344   :  { %1061 = vmatprep.subr.mxu0 %v2549_v38  ;;  %1132 = vmatprep.subr.mxu1 %v2551_v39 }
 0x345   :  { %1062 = vmatpush1.msra.mxu0 %v2555_v40  ;;  %1133 = vmatpush1.msra.mxu1 %v2557_v41 }
 0x346   :  { %1063 = vmatprep.subr.mxu0 %v2561_v42  ;;  %1134 = vmatprep.subr.mxu1 %v2563_v43 }
 0x347   :  { %1064 = vmatpush1.msra.mxu0 %v2567_v44  ;;  %1135 = vmatpush1.msra.mxu1 %v2569_v45  ;;  %v3602_v44 = vld [vmem:[#allocation39_spill] sm:$0xff] }
 0x348   :  { %1065 = vmatprep.subr.mxu0 %v2573_v46  ;;  %1136 = vmatprep.subr.mxu1 %v2575_v47 }
 0x349   :  { %1066 = vmatpush1.msra.mxu0 %v2579_v48  ;;  %1137 = vmatpush1.msra.mxu1 %v2581_v49 }
 0x34a   :  { %1067 = vmatprep.subr.mxu0 %v2585_v50  ;;  %1138 = vmatprep.subr.mxu1 %v2587_v51 }
 0x34b   :  { %1068 = vmatpush1.msra.mxu0 %v2591_v52  ;;  %1139 = vmatpush1.msra.mxu1 %v3578_v12  ;;  %v2997_v12 = vld [vmem:[#allocation7 + $0x1c8] sm:$0xff] }
 0x34c   :  { %1069 = vmatprep.subr.mxu0 %v3579_v13  ;;  %1140 = vmatprep.subr.mxu1 %v3580_v14  ;;  %v3000_v13 = vld [vmem:[#allocation7 + $0x1d8] sm:$0xff]  ;;  %v3006_v14 = vld [vmem:[#allocation7 + $0x1d0] sm:$0xff] }
 0x34d   :  { %1070 = vmatpush1.msra.mxu0 %v3581_v15  ;;  %1141 = vmatpush1.msra.mxu1 %v3582_v16  ;;  %v3009_v15 = vld [vmem:[#allocation7 + $0x1a8] sm:$0xff]  ;;  %v3012_v16 = vld [vmem:[#allocation7 + $0x1b8] sm:$0xff] }
 0x34e   :  { %1071 = vmatprep.subr.mxu0 %v3583_v17  ;;  %1142 = vmatprep.subr.mxu1 %v3584_v18  ;;  %v3015_v17 = vld [vmem:[#allocation7 + $0x1a0] sm:$0xff]  ;;  %v3018_v18 = vld [vmem:[#allocation7 + $0x1b0] sm:$0xff] }
 0x34f   :  { %1072 = vmatpush1.msra.mxu0 %v3585_v19  ;;  %1143 = vmatpush1.msra.mxu1 %v3586_v20  ;;  %v3021_v19 = vld [vmem:[#allocation7 + $0x188] sm:$0xff]  ;;  %v3024_v20 = vld [vmem:[#allocation7 + $0x198] sm:$0xff] }
 0x350   :  { %1073 = vmatprep.subr.mxu0 %v3587_v21  ;;  %1144 = vmatprep.subr.mxu1 %v3588_v22  ;;  %v3027_v21 = vld [vmem:[#allocation7 + $0x180] sm:$0xff]  ;;  %v3030_v22 = vld [vmem:[#allocation7 + $0x190] sm:$0xff] }
 0x351   :  { %1074 = vmatpush1.msra.mxu0 %v3589_v23  ;;  %1145 = vmatpush1.msra.mxu1 %v3590_v24  ;;  %v3033_v23 = vld [vmem:[#allocation7 + $0x168] sm:$0xff]  ;;  %v3036_v24 = vld [vmem:[#allocation7 + $0x178] sm:$0xff] }
 0x352   :  { %1075 = vmatprep.subr.mxu0 %v3591_v25  ;;  %1146 = vmatprep.subr.mxu1 %v3592_v26  ;;  %v3039_v25 = vld [vmem:[#allocation7 + $0x160] sm:$0xff]  ;;  %v3042_v26 = vld [vmem:[#allocation7 + $0x170] sm:$0xff] }
 0x353   :  { %1076 = vmatpush1.msra.mxu0 %v3593_v27  ;;  %1147 = vmatpush1.msra.mxu1 %v3594_v28  ;;  %v3045_v27 = vld [vmem:[#allocation7 + $0x148] sm:$0xff]  ;;  %v3048_v28 = vld [vmem:[#allocation7 + $0x158] sm:$0xff] }
 0x354   :  { %1077 = vmatprep.subr.mxu0 %v3595_v29  ;;  %1148 = vmatprep.subr.mxu1 %v3596_v30  ;;  %v3051_v29 = vld [vmem:[#allocation7 + $0x140] sm:$0xff]  ;;  %v3054_v30 = vld [vmem:[#allocation7 + $0x150] sm:$0xff] }
 0x355   :  { %1078 = vmatpush1.msra.mxu0 %v3597_v31  ;;  %1111 = vmatprep.mubr.f32.mxu0 %v3598_v32  ;;  %v3057_v31 = vld [vmem:[#allocation7 + $0x128] sm:$0xff] }
 0x356   :  { %1149 = vmatpush1.msra.mxu1 %v3599_v33  ;;  %1182 = vmatprep.mubr.f32.mxu1 %v3598_v32  ;;  %v3060_v33 = vld [vmem:[#allocation7 + $0x138] sm:$0xff] }
 0x357   :  { %1229 = vmatprep.subr.mxu0 %v2974_v34  ;;  %1300 = vmatprep.subr.mxu1 %v2977_v35 }
 0x3f6   :  { %v931_v36 = vpop.f32.mrf.mxu0  ;;  %v1002_v38 = vpop.f32.mrf.mxu1 }
 0x3f7   :  { %v1011_v37 = vrot.slane %v931_v36, 5  ;;  %v1013_v43 = vrot.slane %v1002_v38, 5  ;;  %v3063_v36 = vld [vmem:[#allocation7 + $0x120] sm:$0xff]  ;;  %v3069_v38 = vld [vmem:[#allocation7 + $0x108] sm:$0xff] }
 0x3f8   :  { %v933_v39 = vpop.f32.mrf.mxu0  ;;  %v1004_v47 = vpop.f32.mrf.mxu1 }
 0x3f9   :  { %v1019_v40 = vadd.f32 %v1011_v37, %v2736_v62  ;;  %v1012_v41 = vrot.slane %v933_v39, 5  ;;  %v1021_v48 = vadd.f32 %v1013_v43, %v2742_v3  ;;  %v1014_v49 = vrot.slane %v1004_v47, 5  ;;  %v3066_v37 = vld [vmem:[#allocation7 + $0x130] sm:$0xff]  ;;  %v3072_v39 = vld [vmem:[#allocation7 + $0x118] sm:$0xff]  ;;  %v3093_v47 = vld [vmem:[#allocation7 + $0xc8] sm:$0xff] }
 0x3fa   :  { %v3084_v43 = vld [vmem:[#allocation7 + $0xf8] sm:$0xff] }
 0x3fb   :  { %v1023_v42 = vmul.f32 0.5, %v1019_v40  ;;  %v1020_v45 = vadd.f32 %v1012_v41, %v3602_v44  ;;  %v1022_v50 = vadd.f32 %v1014_v49, %v2745_v63  ;;  %v3075_v40 = vld [vmem:[#allocation7 + $0x100] sm:$0xff]  ;;  %v3078_v41 = vld [vmem:[#allocation7 + $0x110] sm:$0xff] }
 0x3fc   :  { %v3099_v49 = vld [vmem:[#allocation7 + $0xc0] sm:$0xff] }
 0x3fd   :  { %2141 = vtanh.f32 %v1023_v42  ;;  %v1027_v46 = vmul.f32 0.5, %v1020_v45  ;;  %v1032_v51 = vmul.f32 0.5, %v1022_v50  ;;  %v3081_v42 = vld [vmem:[#allocation7 + $0xe8] sm:$0xff]  ;;  %v3087_v45 = vld [vmem:[#allocation7 + $0xe0] sm:$0xff]  ;;  %v3102_v50 = vld [vmem:[#allocation7 + $0xd0] sm:$0xff] }
 0x3ff   :  { %2143 = vtanh.f32 %v1027_v46  ;;  %v3090_v46 = vld [vmem:[#allocation7 + $0xf0] sm:$0xff] }
 0x400   :  { %2145 = vtanh.f32 %v1021_v48  ;;  %v3096_v48 = vld [vmem:[#allocation7 + $0xd8] sm:$0xff] }
 0x401   :  { %2147 = vtanh.f32 %v1032_v51  ;;  %v3105_v51 = vld [vmem:[#allocation7 + $0xa8] sm:$0xff] }
 0x40a   :  { %v2142_v52 = vpop.eup %2141 }
 0x40b   :  { %v1025_v4 = vmul.f32 0.5, %v2142_v52  ;;  %v3108_v52 = vld [vmem:[#allocation7 + $0xb8] sm:$0xff] }
 0x40c   :  { %v2144_v57 = vpop.eup %2143 }
 0x40d   :  { %v1026_v5 = vadd.f32 0.5, %v1025_v4  ;;  %v1029_v60 = vmul.f32 0.5, %v2144_v57  ;;  %v2146_v56 = vpop.eup %2145  ;;  %v3111_v4 = vld [vmem:[#allocation7 + $0xa0] sm:$0xff]  ;;  %v3114_v57 = vld [vmem:[#allocation7 + $0xb0] sm:$0xff] }
 0x40e   :  { %v2148_v54 = vpop.eup %2147  ;;  %3603 = vst [vmem:[#allocation40_spill] sm:$0xff] %v3114_v57 }
 0x40f   :  { %v1030_v0 = vadd.f32 0.5, %v1029_v60  ;;  %v1040_v58 = vmul.f32 %v2146_v56, %v1026_v5  ;;  %v1034_v55 = vmul.f32 0.5, %v2148_v54  ;;  %v3117_v5 = vld [vmem:[#allocation7 + $0x88] sm:$0xff]  ;;  %v3120_v60 = vld [vmem:[#allocation7 + $0x98] sm:$0xff]  ;;  %v3138_v54 = vld [vmem:[#allocation7 + $0x70] sm:$0xff] }
 0x410   :  { %3604 = vst [vmem:[#allocation18_spill] sm:$0xff] %v3117_v5  ;;  %3605 = vst [vmem:[#allocation19_spill] sm:$0xff] %v3120_v60  ;;  %v3129_v56 = vld [vmem:[#allocation7 + $0x68] sm:$0xff] }
 0x411   :  { %v1039_v61 = vmul.f32 %v1037_v2, %v1030_v0  ;;  %v1035_v9 = vadd.f32 0.5, %v1034_v55  ;;  %v3123_v0 = vld [vmem:[#allocation7 + $0x80] sm:$0xff]  ;;  %v3126_v2 = vld [vmem:[#allocation7 + $0x90] sm:$0xff]  ;;  %3608 = vst [vmem:[#allocation22_spill] sm:$0xff] %v3129_v56  ;;  %3611 = vst [vmem:[#allocation25_spill] sm:$0xff] %v3138_v54 }
 0x412   :  { %3606 = vst [vmem:[#allocation20_spill] sm:$0xff] %v3123_v0  ;;  %3607 = vst [vmem:[#allocation21_spill] sm:$0xff] %v3126_v2  ;;  %v3141_v55 = vld [vmem:[#allocation7 + $0x48] sm:$0xff] }
 0x413   :  { %v2985_v6 = vadd.f32 %v1040_v58, %v1039_v61  ;;  %v3132_v61 = vld [vmem:[#allocation7 + $0x78] sm:$0xff]  ;;  %v3135_v58 = vld [vmem:[#allocation7 + $0x60] sm:$0xff]  ;;  %3612 = vst [vmem:[#allocation26_spill] sm:$0xff] %v3141_v55 }
 0x414   :  { %3609 = vst [vmem:[#allocation23_spill] sm:$0xff] %v3132_v61  ;;  %3610 = vst [vmem:[#allocation24_spill] sm:$0xff] %v3135_v58 }
 0x415   :  { %2149 = vtanh.f32 %v2985_v6 }
 0x422   :  { %v2150_v8 = vpop.eup %2149 }
 0x423   :  { %v1043_v10 = vmul.f32 %v2150_v8, %v1035_v9  ;;  %v3144_v9 = vld [vmem:[#allocation7 + $0x58] sm:$0xff]  ;;  %v3147_v8 = vld [vmem:[#allocation7 + $0x40] sm:$0xff] }
 0x424   :  { %3613 = vst [vmem:[#allocation27_spill] sm:$0xff] %v3144_v9  ;;  %3614 = vst [vmem:[#allocation28_spill] sm:$0xff] %v3147_v8 }
 0x425   :  { %v1045_v53 = vrot.slane %v1043_v10, 3  ;;  %v2989_v59 = vsel %vm1776_vm3, %v2908_v1, %v1043_v10  ;;  %v3003_v1 = vld [vmem:[#allocation7 + $0x1c0] sm:$0xff]  ;;  %v3150_v10 = vld [vmem:[#allocation7 + $0x50] sm:$0xff] }
 0x426   :  { %3615 = vst [vmem:[#allocation29_spill] sm:$0xff] %v3150_v10 }
 0x427   :  { %1112 = vmatmul.mubr.f32.vlgmr.msra.gmra.mxu0 %v1045_v53  ;;  %1183 = vmatmul.mubr.f32.vlgmr.msra.gmra.mxu1 %v1045_v53  ;;  %v3153_v53 = vld [vmem:[#allocation7 + $0x28] sm:$0xff] }
 0x428   :  { %1230 = vmatpush1.msra.mxu0 %v2991_v11  ;;  %1301 = vmatpush1.msra.mxu1 %v2994_v7  ;;  %3616 = vst [vmem:[#allocation30_spill] sm:$0xff] %v3153_v53 }
 0x429   :  { %1231 = vmatprep.subr.mxu0 %v2997_v12  ;;  %1302 = vmatprep.subr.mxu1 %v3000_v13 }
 0x42a   :  { %1232 = vmatpush1.msra.mxu0 %v3003_v1  ;;  %1303 = vmatpush1.msra.mxu1 %v3006_v14 }
 0x42b   :  { %1233 = vmatprep.subr.mxu0 %v3009_v15  ;;  %1304 = vmatprep.subr.mxu1 %v3012_v16 }
 0x42c   :  { %1234 = vmatpush1.msra.mxu0 %v3015_v17  ;;  %1305 = vmatpush1.msra.mxu1 %v3018_v18 }
 0x42d   :  { %1235 = vmatprep.subr.mxu0 %v3021_v19  ;;  %1306 = vmatprep.subr.mxu1 %v3024_v20 }
 0x42e   :  { %1236 = vmatpush1.msra.mxu0 %v3027_v21  ;;  %1307 = vmatpush1.msra.mxu1 %v3030_v22 }
 0x42f   :  { %1237 = vmatprep.subr.mxu0 %v3033_v23  ;;  %1308 = vmatprep.subr.mxu1 %v3036_v24 }
 0x430   :  { %1238 = vmatpush1.msra.mxu0 %v3039_v25  ;;  %1309 = vmatpush1.msra.mxu1 %v3042_v26 }
 0x431   :  { %1239 = vmatprep.subr.mxu0 %v3045_v27  ;;  %1310 = vmatprep.subr.mxu1 %v3048_v28 }
 0x432   :  { %1240 = vmatpush1.msra.mxu0 %v3051_v29  ;;  %1311 = vmatpush1.msra.mxu1 %v3054_v30 }
 0x433   :  { %1241 = vmatprep.subr.mxu0 %v3057_v31  ;;  %1312 = vmatprep.subr.mxu1 %v3060_v33 }
 0x434   :  { %1242 = vmatpush1.msra.mxu0 %v3063_v36  ;;  %1313 = vmatpush1.msra.mxu1 %v3066_v37 }
 0x435   :  { %1243 = vmatprep.subr.mxu0 %v3069_v38  ;;  %1314 = vmatprep.subr.mxu1 %v3072_v39 }
 0x436   :  { %1244 = vmatpush1.msra.mxu0 %v3075_v40  ;;  %1315 = vmatpush1.msra.mxu1 %v3078_v41 }
 0x437   :  { %1245 = vmatprep.subr.mxu0 %v3081_v42  ;;  %1316 = vmatprep.subr.mxu1 %v3084_v43 }
 0x438   :  { %1246 = vmatpush1.msra.mxu0 %v3087_v45  ;;  %1317 = vmatpush1.msra.mxu1 %v3090_v46 }
 0x439   :  { %1247 = vmatprep.subr.mxu0 %v3093_v47  ;;  %1318 = vmatprep.subr.mxu1 %v3096_v48 }
 0x43a   :  { %1248 = vmatpush1.msra.mxu0 %v3099_v49  ;;  %1319 = vmatpush1.msra.mxu1 %v3102_v50 }
 0x43b   :  { %1249 = vmatprep.subr.mxu0 %v3105_v51  ;;  %1320 = vmatprep.subr.mxu1 %v3108_v52 }
 0x43c   :  { %1250 = vmatpush1.msra.mxu0 %v3111_v4  ;;  %1321 = vmatpush1.msra.mxu1 %v3114_v57 }
 0x43d   :  { %1251 = vmatprep.subr.mxu0 %v3117_v5  ;;  %1322 = vmatprep.subr.mxu1 %v3120_v60 }
 0x43e   :  { %1252 = vmatpush1.msra.mxu0 %v3123_v0  ;;  %1323 = vmatpush1.msra.mxu1 %v3126_v2 }
 0x43f   :  { %1253 = vmatprep.subr.mxu0 %v3129_v56  ;;  %1324 = vmatprep.subr.mxu1 %v3132_v61 }
 0x440   :  { %1254 = vmatpush1.msra.mxu0 %v3135_v58  ;;  %1325 = vmatpush1.msra.mxu1 %v3138_v54  ;;  %v3156_v54 = vld [vmem:[#allocation7 + $0x38] sm:$0xff] }
 0x441   :  { %1255 = vmatprep.subr.mxu0 %v3141_v55  ;;  %1326 = vmatprep.subr.mxu1 %v3144_v9  ;;  %3617 = vst [vmem:[#allocation31_spill] sm:$0xff] %v3156_v54  ;;  %v3159_v55 = vld [vmem:[#allocation7 + $0x20] sm:$0xff]  ;;  %v3162_v9 = vld [vmem:[#allocation7 + $0x30] sm:$0xff] }
 0x442   :  { %1256 = vmatpush1.msra.mxu0 %v3147_v8  ;;  %1327 = vmatpush1.msra.mxu1 %v3150_v10  ;;  %3618 = vst [vmem:[#allocation32_spill] sm:$0xff] %v3159_v55  ;;  %3619 = vst [vmem:[#allocation33_spill] sm:$0xff] %v3162_v9  ;;  %v3165_v8 = vld [vmem:[#allocation7 + $0x8] sm:$0xff]  ;;  %v3168_v10 = vld [vmem:[#allocation7 + $0x18] sm:$0xff] }
 0x443   :  { %1257 = vmatprep.subr.mxu0 %v3153_v53  ;;  %1328 = vmatprep.subr.mxu1 %v3156_v54  ;;  %3620 = vst [vmem:[#allocation34_spill] sm:$0xff] %v3165_v8  ;;  %3621 = vst [vmem:[#allocation35_spill] sm:$0xff] %v3168_v10  ;;  %v3171_v53 = vld [vmem:[#allocation7] sm:$0xff]  ;;  %v3175_v54 = vld [vmem:[#allocation7 + $0x10] sm:$0xff] }
 0x444   :  { %1258 = vmatpush1.msra.mxu0 %v3159_v55  ;;  %1329 = vmatpush1.msra.mxu1 %v3162_v9  ;;  %3622 = vst [vmem:[#allocation36_spill] sm:$0xff] %v3171_v53  ;;  %3623 = vst [vmem:[#allocation37_spill] sm:$0xff] %v3175_v54 }
 0x445   :  { %1259 = vmatprep.subr.mxu0 %v3165_v8  ;;  %1330 = vmatprep.subr.mxu1 %v3168_v10 }
 0x446   :  { %1260 = vmatpush1.msra.mxu0 %v3171_v53  ;;  %1293 = vmatprep.mubr.f32.mxu0 %v3598_v32 }
 0x447   :  { %1331 = vmatpush1.msra.mxu1 %v3175_v54  ;;  %1364 = vmatprep.mubr.f32.mxu1 %v3598_v32 }
 0x448   :  { %1411 = vmatprep.subr.mxu0 %v2974_v34  ;;  %1482 = vmatprep.subr.mxu1 %v2977_v35 }
 0x4e7   :  { %v1113_v8 = vpop.f32.mrf.mxu0  ;;  %v1184_v55 = vpop.f32.mrf.mxu1 }
 0x4e8   :  { %v1193_v9 = vrot.slane %v1113_v8, 4  ;;  %v1195_v56 = vrot.slane %v1184_v55, 4 }
 0x4e9   :  { %v1115_v10 = vpop.f32.mrf.mxu0  ;;  %v1186_v54 = vpop.f32.mrf.mxu1 }
 0x4ea   :  { %v1201_v58 = vadd.f32 %v1193_v9, %v2736_v62  ;;  %v1194_v61 = vrot.slane %v1115_v10, 4  ;;  %v1203_v32 = vadd.f32 %v1195_v56, %v2742_v3  ;;  %v1196_v34 = vrot.slane %v1186_v54, 4  ;;  %v3627_v54 = vld [vmem:[#allocation20_spill] sm:$0xff] }
 0x4ec   :  { %v1205_v53 = vmul.f32 0.5, %v1201_v58  ;;  %v1202_v2 = vadd.f32 %v1194_v61, %v3602_v44  ;;  %v1204_v35 = vadd.f32 %v1196_v34, %v2745_v63  ;;  %v1219_v61 = vrot.slane %v2985_v6, 7  ;;  %v3624_v6 = vld [vmem:[#allocation40_spill] sm:$0xff] }
 0x4ee   :  { %2151 = vtanh.f32 %v1205_v53  ;;  %v1209_v0 = vmul.f32 0.5, %v1202_v2  ;;  %v1214_v8 = vmul.f32 0.5, %v1204_v35 }
 0x4f0   :  { %2153 = vtanh.f32 %v1209_v0 }
 0x4f1   :  { %2155 = vtanh.f32 %v1203_v32 }
 0x4f2   :  { %2157 = vtanh.f32 %v1214_v8  ;;  %v3628_v8 = vld [vmem:[#allocation21_spill] sm:$0xff] }
 0x4fb   :  { %v2152_v60 = vpop.eup %2151 }
 0x4fc   :  { %v1207_v5 = vmul.f32 0.5, %v2152_v60 }
 0x4fd   :  { %v2154_v57 = vpop.eup %2153 }
 0x4fe   :  { %v1208_v9 = vadd.f32 0.5, %v1207_v5  ;;  %v1211_v10 = vmul.f32 0.5, %v2154_v57  ;;  %v2156_v55 = vpop.eup %2155  ;;  %v3626_v5 = vld [vmem:[#allocation19_spill] sm:$0xff] }
 0x4ff   :  { %v2158_v32 = vpop.eup %2157 }
 0x500   :  { %v1212_v58 = vadd.f32 0.5, %v1211_v10  ;;  %v1222_v53 = vmul.f32 %v2156_v55, %v1208_v9  ;;  %v1216_v0 = vmul.f32 0.5, %v2158_v32  ;;  %v3629_v9 = vld [vmem:[#allocation22_spill] sm:$0xff]  ;;  %v3630_v10 = vld [vmem:[#allocation23_spill] sm:$0xff]  ;;  %v3636_v32 = vld [vmem:[#allocation29_spill] sm:$0xff] }
 0x501   :  { %v3633_v55 = vld [vmem:[#allocation26_spill] sm:$0xff] }
 0x502   :  { %v1221_v2 = vmul.f32 %v1219_v61, %v1212_v58  ;;  %v1217_v34 = vadd.f32 0.5, %v1216_v0  ;;  %v3631_v58 = vld [vmem:[#allocation24_spill] sm:$0xff]  ;;  %v3632_v61 = vld [vmem:[#allocation25_spill] sm:$0xff]  ;;  %v3637_v0 = vld [vmem:[#allocation30_spill] sm:$0xff] }
 0x504   :  { %v3186_v44 = vadd.f32 %v1222_v53, %v1221_v2  ;;  %v3634_v2 = vld [vmem:[#allocation27_spill] sm:$0xff]  ;;  %v3635_v53 = vld [vmem:[#allocation28_spill] sm:$0xff] }
 0x506   :  { %2159 = vtanh.f32 %v3186_v44 }
 0x513   :  { %v2160_v35 = vpop.eup %2159 }
 0x514   :  { %v1225_v60 = vmul.f32 %v2160_v35, %v1217_v34  ;;  %v3638_v34 = vld [vmem:[#allocation31_spill] sm:$0xff]  ;;  %v3639_v35 = vld [vmem:[#allocation32_spill] sm:$0xff] }
 0x516   :  { %v1227_v56 = vrot.slane %v1225_v60, 4  ;;  %v3190_v57 = vsel %vm1778_vm4, %v2989_v59, %v1225_v60  ;;  %v3625_v59 = vld [vmem:[#allocation18_spill] sm:$0xff]  ;;  %v3640_v60 = vld [vmem:[#allocation33_spill] sm:$0xff] }
 0x518   :  { %1294 = vmatmul.mubr.f32.vlgmr.msra.gmra.mxu0 %v1227_v56  ;;  %1365 = vmatmul.mubr.f32.vlgmr.msra.gmra.mxu1 %v1227_v56  ;;  %v3641_v56 = vld [vmem:[#allocation34_spill] sm:$0xff] }
 0x519   :  { %1412 = vmatpush1.msra.mxu0 %v2991_v11  ;;  %1483 = vmatpush1.msra.mxu1 %v2994_v7 }
 0x51a   :  { %1413 = vmatprep.subr.mxu0 %v2997_v12  ;;  %1484 = vmatprep.subr.mxu1 %v3000_v13 }
 0x51b   :  { %1414 = vmatpush1.msra.mxu0 %v3003_v1  ;;  %1485 = vmatpush1.msra.mxu1 %v3006_v14 }
 0x51c   :  { %1415 = vmatprep.subr.mxu0 %v3009_v15  ;;  %1486 = vmatprep.subr.mxu1 %v3012_v16 }
 0x51d   :  { %1416 = vmatpush1.msra.mxu0 %v3015_v17  ;;  %1487 = vmatpush1.msra.mxu1 %v3018_v18 }
 0x51e   :  { %1417 = vmatprep.subr.mxu0 %v3021_v19  ;;  %1488 = vmatprep.subr.mxu1 %v3024_v20 }
 0x51f   :  { %1418 = vmatpush1.msra.mxu0 %v3027_v21  ;;  %1489 = vmatpush1.msra.mxu1 %v3030_v22 }
 0x520   :  { %1419 = vmatprep.subr.mxu0 %v3033_v23  ;;  %1490 = vmatprep.subr.mxu1 %v3036_v24 }
 0x521   :  { %1420 = vmatpush1.msra.mxu0 %v3039_v25  ;;  %1491 = vmatpush1.msra.mxu1 %v3042_v26 }
 0x522   :  { %1421 = vmatprep.subr.mxu0 %v3045_v27  ;;  %1492 = vmatprep.subr.mxu1 %v3048_v28 }
 0x523   :  { %1422 = vmatpush1.msra.mxu0 %v3051_v29  ;;  %1493 = vmatpush1.msra.mxu1 %v3054_v30 }
 0x524   :  { %1423 = vmatprep.subr.mxu0 %v3057_v31  ;;  %1494 = vmatprep.subr.mxu1 %v3060_v33 }
 0x525   :  { %1424 = vmatpush1.msra.mxu0 %v3063_v36  ;;  %1495 = vmatpush1.msra.mxu1 %v3066_v37 }
 0x526   :  { %1425 = vmatprep.subr.mxu0 %v3069_v38  ;;  %1496 = vmatprep.subr.mxu1 %v3072_v39 }
 0x527   :  { %1426 = vmatpush1.msra.mxu0 %v3075_v40  ;;  %1497 = vmatpush1.msra.mxu1 %v3078_v41 }
 0x528   :  { %1427 = vmatprep.subr.mxu0 %v3081_v42  ;;  %1498 = vmatprep.subr.mxu1 %v3084_v43 }
 0x529   :  { %1428 = vmatpush1.msra.mxu0 %v3087_v45  ;;  %1499 = vmatpush1.msra.mxu1 %v3090_v46 }
 0x52a   :  { %1429 = vmatprep.subr.mxu0 %v3093_v47  ;;  %1500 = vmatprep.subr.mxu1 %v3096_v48 }
 0x52b   :  { %1430 = vmatpush1.msra.mxu0 %v3099_v49  ;;  %1501 = vmatpush1.msra.mxu1 %v3102_v50 }
 0x52c   :  { %1431 = vmatprep.subr.mxu0 %v3105_v51  ;;  %1502 = vmatprep.subr.mxu1 %v3108_v52 }
 0x52d   :  { %1432 = vmatpush1.msra.mxu0 %v3111_v4  ;;  %1503 = vmatpush1.msra.mxu1 %v3624_v6 }
 0x52e   :  { %1433 = vmatprep.subr.mxu0 %v3625_v59  ;;  %1504 = vmatprep.subr.mxu1 %v3626_v5 }
 0x52f   :  { %1434 = vmatpush1.msra.mxu0 %v3627_v54  ;;  %1505 = vmatpush1.msra.mxu1 %v3628_v8 }
 0x530   :  { %1435 = vmatprep.subr.mxu0 %v3629_v9  ;;  %1506 = vmatprep.subr.mxu1 %v3630_v10 }
 0x531   :  { %1436 = vmatpush1.msra.mxu0 %v3631_v58  ;;  %1507 = vmatpush1.msra.mxu1 %v3632_v61  ;;  %v3642_v58 = vld [vmem:[#allocation35_spill] sm:$0xff]  ;;  %v3643_v61 = vld [vmem:[#allocation36_spill] sm:$0xff] }
 0x532   :  { %1437 = vmatprep.subr.mxu0 %v3633_v55  ;;  %1508 = vmatprep.subr.mxu1 %v3634_v2  ;;  %v3644_v55 = vmov 0.0   ;;  %v3645_v2 = vld [vmem:[#allocation37_spill] sm:$0xff] }
 0x533   :  { %1438 = vmatpush1.msra.mxu0 %v3635_v53  ;;  %1509 = vmatpush1.msra.mxu1 %v3636_v32  ;;  %v3646_v32 = vld [vmem:[#allocation16_spill] sm:$0xff] }
 0x534   :  { %1439 = vmatprep.subr.mxu0 %v3637_v0  ;;  %1510 = vmatprep.subr.mxu1 %v3638_v34  ;;  %v3647_v0 = vld [vmem:[#allocation17_spill] sm:$0xff] }
 0x535   :  { %1440 = vmatpush1.msra.mxu0 %v3639_v35  ;;  %1511 = vmatpush1.msra.mxu1 %v3640_v60 }
 0x536   :  { %1441 = vmatprep.subr.mxu0 %v3641_v56  ;;  %1512 = vmatprep.subr.mxu1 %v3642_v58 }
 0x537   :  { %1442 = vmatpush1.msra.mxu0 %v3643_v61  ;;  %1475 = vmatprep.mubr.f32.mxu0 %v3644_v55  ;;  %v3648_v61 = vld [vmem:[#allocation39_spill] sm:$0xff] }
 0x538   :  { %1513 = vmatpush1.msra.mxu1 %v3645_v2  ;;  %1546 = vmatprep.mubr.f32.mxu1 %v3644_v55 }
 0x539   :  { %1593 = vmatprep.subr.mxu0 %v3646_v32  ;;  %1664 = vmatprep.subr.mxu1 %v3647_v0 }
 0x5d8   :  { %v1295_v34 = vpop.f32.mrf.mxu0  ;;  %v1366_v53 = vpop.f32.mrf.mxu1 }
 0x5d9   :  { %v1375_v35 = vrot.slane %v1295_v34, 3  ;;  %v1377_v9 = vrot.slane %v1366_v53, 3 }
 0x5da   :  { %v1297_v60 = vpop.f32.mrf.mxu0  ;;  %v1368_v2 = vpop.f32.mrf.mxu1 }
 0x5db   :  { %v1383_v56 = vadd.f32 %v1375_v35, %v2736_v62  ;;  %v1376_v10 = vrot.slane %v1297_v60, 3  ;;  %v1385_v55 = vadd.f32 %v1377_v9, %v2742_v3  ;;  %v1378_v32 = vrot.slane %v1368_v2, 3 }
 0x5dd   :  { %v1387_v58 = vmul.f32 0.5, %v1383_v56  ;;  %v1384_v8 = vadd.f32 %v1376_v10, %v3648_v61  ;;  %v1386_v0 = vadd.f32 %v1378_v32, %v2745_v63  ;;  %v1401_v10 = vrot.slane %v3186_v44, 7  ;;  %v3649_v44 = vld [vmem:[#allocation40_spill] sm:$0xff] }
 0x5df   :  { %2161 = vtanh.f32 %v1387_v58  ;;  %v1391_v54 = vmul.f32 0.5, %v1384_v8  ;;  %v1396_v34 = vmul.f32 0.5, %v1386_v0 }
 0x5e1   :  { %2163 = vtanh.f32 %v1391_v54 }
 0x5e2   :  { %2165 = vtanh.f32 %v1385_v55 }
 0x5e3   :  { %2167 = vtanh.f32 %v1396_v34 }
 0x5ec   :  { %v2162_v5 = vpop.eup %2161 }
 0x5ed   :  { %v1389_v59 = vmul.f32 0.5, %v2162_v5 }
 0x5ee   :  { %v2164_v6 = vpop.eup %2163 }
 0x5ef   :  { %v1390_v35 = vadd.f32 0.5, %v1389_v59  ;;  %v1393_v60 = vmul.f32 0.5, %v2164_v6  ;;  %v2166_v58 = vpop.eup %2165 }
 0x5f0   :  { %v2168_v54 = vpop.eup %2167 }
 0x5f1   :  { %v1394_v53 = vadd.f32 0.5, %v1393_v60  ;;  %v1404_v56 = vmul.f32 %v2166_v58, %v1390_v35  ;;  %v1398_v9 = vmul.f32 0.5, %v2168_v54 }
 0x5f3   :  { %v1403_v8 = vmul.f32 %v1401_v10, %v1394_v53  ;;  %v1399_v55 = vadd.f32 0.5, %v1398_v9 }
 0x5f5   :  { %v3263_v61 = vadd.f32 %v1404_v56, %v1403_v8 }
 0x5f7   :  { %2169 = vtanh.f32 %v3263_v61  ;;  %v1583_v0 = vrot.slane %v3263_v61, 7  ;;  %v1801_v61 = vld [vmem:[#allocation8 + $0x78] sm:$0xff] }
 0x604   :  { %v2170_v2 = vpop.eup %2169 }
 0x605   :  { %v1407_v5 = vmul.f32 %v2170_v2, %v1399_v55  ;;  %v1800_v2 = vld [vmem:[#allocation8 + $0x70] sm:$0xff] }
 0x607   :  { %v1409_v32 = vrot.slane %v1407_v5, 5  ;;  %v3267_v6 = vsel %vm1780_vm5, %v3190_v57, %v1407_v5  ;;  %v1799_v5 = vld [vmem:[#allocation8 + $0x68] sm:$0xff] }
 0x609   :  { %1476 = vmatmul.mubr.f32.vlgmr.msra.gmra.mxu0 %v1409_v32  ;;  %1547 = vmatmul.mubr.f32.vlgmr.msra.gmra.mxu1 %v1409_v32  ;;  %v1798_v32 = vld [vmem:[#allocation8 + $0x60] sm:$0xff] }
 0x60a   :  { %1594 = vmatpush1.msra.mxu0 %v2991_v11  ;;  %1665 = vmatpush1.msra.mxu1 %v2994_v7  ;;  %v3650_v11 = vld [vmem:[#allocation18_spill] sm:$0xff]  ;;  %v3651_v7 = vld [vmem:[#allocation19_spill] sm:$0xff] }
 0x60b   :  { %1595 = vmatprep.subr.mxu0 %v2997_v12  ;;  %1666 = vmatprep.subr.mxu1 %v3000_v13  ;;  %v3652_v12 = vld [vmem:[#allocation20_spill] sm:$0xff]  ;;  %v3653_v13 = vld [vmem:[#allocation21_spill] sm:$0xff] }
 0x60c   :  { %1596 = vmatpush1.msra.mxu0 %v3003_v1  ;;  %1667 = vmatpush1.msra.mxu1 %v3006_v14  ;;  %v3654_v1 = vld [vmem:[#allocation22_spill] sm:$0xff]  ;;  %v3655_v14 = vld [vmem:[#allocation23_spill] sm:$0xff] }
 0x60d   :  { %1597 = vmatprep.subr.mxu0 %v3009_v15  ;;  %1668 = vmatprep.subr.mxu1 %v3012_v16  ;;  %v3656_v15 = vld [vmem:[#allocation24_spill] sm:$0xff]  ;;  %v3657_v16 = vld [vmem:[#allocation25_spill] sm:$0xff] }
 0x60e   :  { %1598 = vmatpush1.msra.mxu0 %v3015_v17  ;;  %1669 = vmatpush1.msra.mxu1 %v3018_v18  ;;  %v3658_v17 = vld [vmem:[#allocation26_spill] sm:$0xff]  ;;  %v3659_v18 = vld [vmem:[#allocation27_spill] sm:$0xff] }
 0x60f   :  { %1599 = vmatprep.subr.mxu0 %v3021_v19  ;;  %1670 = vmatprep.subr.mxu1 %v3024_v20  ;;  %v3660_v19 = vld [vmem:[#allocation28_spill] sm:$0xff]  ;;  %v3661_v20 = vld [vmem:[#allocation29_spill] sm:$0xff] }
 0x610   :  { %1600 = vmatpush1.msra.mxu0 %v3027_v21  ;;  %1671 = vmatpush1.msra.mxu1 %v3030_v22  ;;  %v3662_v21 = vld [vmem:[#allocation30_spill] sm:$0xff]  ;;  %v3663_v22 = vld [vmem:[#allocation31_spill] sm:$0xff] }
 0x611   :  { %1601 = vmatprep.subr.mxu0 %v3033_v23  ;;  %1672 = vmatprep.subr.mxu1 %v3036_v24  ;;  %v3664_v23 = vld [vmem:[#allocation32_spill] sm:$0xff]  ;;  %v3665_v24 = vld [vmem:[#allocation33_spill] sm:$0xff] }
 0x612   :  { %1602 = vmatpush1.msra.mxu0 %v3039_v25  ;;  %1673 = vmatpush1.msra.mxu1 %v3042_v26  ;;  %v3666_v25 = vld [vmem:[#allocation34_spill] sm:$0xff]  ;;  %v3667_v26 = vld [vmem:[#allocation35_spill] sm:$0xff] }
 0x613   :  { %1603 = vmatprep.subr.mxu0 %v3045_v27  ;;  %1674 = vmatprep.subr.mxu1 %v3048_v28  ;;  %v3668_v27 = vld [vmem:[#allocation36_spill] sm:$0xff]  ;;  %v3669_v28 = vmov 0.0  }
 0x614   :  { %1604 = vmatpush1.msra.mxu0 %v3051_v29  ;;  %1675 = vmatpush1.msra.mxu1 %v3054_v30  ;;  %v3670_v29 = vld [vmem:[#allocation37_spill] sm:$0xff] }
 0x615   :  { %1605 = vmatprep.subr.mxu0 %v3057_v31  ;;  %1676 = vmatprep.subr.mxu1 %v3060_v33 }
 0x616   :  { %1606 = vmatpush1.msra.mxu0 %v3063_v36  ;;  %1677 = vmatpush1.msra.mxu1 %v3066_v37 }
 0x617   :  { %1607 = vmatprep.subr.mxu0 %v3069_v38  ;;  %1678 = vmatprep.subr.mxu1 %v3072_v39 }
 0x618   :  { %1608 = vmatpush1.msra.mxu0 %v3075_v40  ;;  %1679 = vmatpush1.msra.mxu1 %v3078_v41  ;;  %v3671_v41 = vld [vmem:[#allocation39_spill] sm:$0xff] }
 0x619   :  { %1609 = vmatprep.subr.mxu0 %v3081_v42  ;;  %1680 = vmatprep.subr.mxu1 %v3084_v43 }
 0x61a   :  { %1610 = vmatpush1.msra.mxu0 %v3087_v45  ;;  %1681 = vmatpush1.msra.mxu1 %v3090_v46 }
 0x61b   :  { %1611 = vmatprep.subr.mxu0 %v3093_v47  ;;  %1682 = vmatprep.subr.mxu1 %v3096_v48 }
 0x61c   :  { %1612 = vmatpush1.msra.mxu0 %v3099_v49  ;;  %1683 = vmatpush1.msra.mxu1 %v3102_v50 }
 0x61d   :  { %1613 = vmatprep.subr.mxu0 %v3105_v51  ;;  %1684 = vmatprep.subr.mxu1 %v3108_v52 }
 0x61e   :  { %1614 = vmatpush1.msra.mxu0 %v3111_v4  ;;  %1685 = vmatpush1.msra.mxu1 %v3649_v44  ;;  %v1796_v44 = vld [vmem:[#allocation8 + $0x50] sm:$0xff] }
 0x61f   :  { %1615 = vmatprep.subr.mxu0 %v3650_v11  ;;  %1686 = vmatprep.subr.mxu1 %v3651_v7  ;;  %v1795_v11 = vld [vmem:[#allocation8 + $0x48] sm:$0xff]  ;;  %v1794_v7 = vld [vmem:[#allocation8 + $0x40] sm:$0xff] }
 0x620   :  { %1616 = vmatpush1.msra.mxu0 %v3652_v12  ;;  %1687 = vmatpush1.msra.mxu1 %v3653_v13  ;;  %v1793_v12 = vld [vmem:[#allocation8 + $0x38] sm:$0xff]  ;;  %v1792_v13 = vld [vmem:[#allocation8 + $0x30] sm:$0xff] }
 0x621   :  { %1617 = vmatprep.subr.mxu0 %v3654_v1  ;;  %1688 = vmatprep.subr.mxu1 %v3655_v14  ;;  %v1791_v1 = vld [vmem:[#allocation8 + $0x28] sm:$0xff]  ;;  %v1790_v14 = vld [vmem:[#allocation8 + $0x20] sm:$0xff] }
 0x622   :  { %1618 = vmatpush1.msra.mxu0 %v3656_v15  ;;  %1689 = vmatpush1.msra.mxu1 %v3657_v16  ;;  %v1789_v15 = vld [vmem:[#allocation8 + $0x18] sm:$0xff]  ;;  %v1788_v16 = vld [vmem:[#allocation8 + $0x10] sm:$0xff] }
 0x623   :  { %1619 = vmatprep.subr.mxu0 %v3658_v17  ;;  %1690 = vmatprep.subr.mxu1 %v3659_v18  ;;  %v1787_v17 = vld [vmem:[#allocation8 + $0x8] sm:$0xff]  ;;  %v1786_v18 = vld [vmem:[#allocation8] sm:$0xff] }
 0x624   :  { %1620 = vmatpush1.msra.mxu0 %v3660_v19  ;;  %1691 = vmatpush1.msra.mxu1 %v3661_v20  ;;  %v1895_v19 = vld [vmem:[#allocation10 + $0x78] sm:$0xff]  ;;  %v1894_v20 = vld [vmem:[#allocation10 + $0x70] sm:$0xff] }
 0x625   :  { %1621 = vmatprep.subr.mxu0 %v3662_v21  ;;  %1692 = vmatprep.subr.mxu1 %v3663_v22  ;;  %v1893_v21 = vld [vmem:[#allocation10 + $0x68] sm:$0xff]  ;;  %v1892_v22 = vld [vmem:[#allocation10 + $0x60] sm:$0xff] }
 0x626   :  { %1622 = vmatpush1.msra.mxu0 %v3664_v23  ;;  %1693 = vmatpush1.msra.mxu1 %v3665_v24  ;;  %v1891_v23 = vld [vmem:[#allocation10 + $0x58] sm:$0xff]  ;;  %v1890_v24 = vld [vmem:[#allocation10 + $0x50] sm:$0xff] }
 0x627   :  { %1623 = vmatprep.subr.mxu0 %v3666_v25  ;;  %1694 = vmatprep.subr.mxu1 %v3667_v26  ;;  %v1889_v25 = vld [vmem:[#allocation10 + $0x48] sm:$0xff]  ;;  %v1888_v26 = vld [vmem:[#allocation10 + $0x40] sm:$0xff] }
 0x628   :  { %1624 = vmatpush1.msra.mxu0 %v3668_v27  ;;  %1657 = vmatprep.mubr.f32.mxu0 %v3669_v28  ;;  %v1887_v27 = vld [vmem:[#allocation10 + $0x38] sm:$0xff] }
 0x629   :  { %1695 = vmatpush1.msra.mxu1 %v3670_v29  ;;  %1728 = vmatprep.mubr.f32.mxu1 %v3669_v28  ;;  %v1886_v29 = vld [vmem:[#allocation10 + $0x30] sm:$0xff] }
 0x62a   :  { %2029 = vmatprep.subr.mxu0 %v3669_v28  ;;  %2064 = vmatprep.subr.mxu1 %v3669_v28 }
 0x6c9   :  { %v1477_v30 = vpop.f32.mrf.mxu0  ;;  %v1548_v33 = vpop.f32.mrf.mxu1 }
 0x6ca   :  { %v1557_v31 = vrot.slane %v1477_v30, 2  ;;  %v1559_v40 = vrot.slane %v1548_v33, 2  ;;  %v1885_v30 = vld [vmem:[#allocation10 + $0x28] sm:$0xff]  ;;  %v1883_v33 = vld [vmem:[#allocation10 + $0x18] sm:$0xff] }
 0x6cb   :  { %v1479_v36 = vpop.f32.mrf.mxu0  ;;  %v1550_v45 = vpop.f32.mrf.mxu1 }
 0x6cc   :  { %v1565_v37 = vadd.f32 %v1557_v31, %v2736_v62  ;;  %v1558_v38 = vrot.slane %v1479_v36, 2  ;;  %v1567_v46 = vadd.f32 %v1559_v40, %v2742_v3  ;;  %v1560_v47 = vrot.slane %v1550_v45, 2  ;;  %v1884_v31 = vld [vmem:[#allocation10 + $0x20] sm:$0xff] }
 0x6ce   :  { %v1569_v39 = vmul.f32 0.5, %v1565_v37  ;;  %v1566_v42 = vadd.f32 %v1558_v38, %v3671_v41  ;;  %v1568_v48 = vadd.f32 %v1560_v47, %v2745_v63 }
 0x6d0   :  { %2171 = vtanh.f32 %v1569_v39  ;;  %v1573_v43 = vmul.f32 0.5, %v1566_v42  ;;  %v1578_v49 = vmul.f32 0.5, %v1568_v48 }
 0x6d2   :  { %2173 = vtanh.f32 %v1573_v43 }
 0x6d3   :  { %2175 = vtanh.f32 %v1567_v46 }
 0x6d4   :  { %2177 = vtanh.f32 %v1578_v49 }
 0x6dd   :  { %v2172_v50 = vpop.eup %2171 }
 0x6de   :  { %v1571_v51 = vmul.f32 0.5, %v2172_v50 }
 0x6df   :  { %v2174_v52 = vpop.eup %2173 }
 0x6e0   :  { %v1572_v4 = vadd.f32 0.5, %v1571_v51  ;;  %v1575_v57 = vmul.f32 0.5, %v2174_v52  ;;  %v2176_v34 = vpop.eup %2175 }
 0x6e1   :  { %v2178_v10 = vpop.eup %2177 }
 0x6e2   :  { %v1576_v59 = vadd.f32 0.5, %v1575_v57  ;;  %v1586_v60 = vmul.f32 %v2176_v34, %v1572_v4  ;;  %v1580_v58 = vmul.f32 0.5, %v2178_v10 }
 0x6e4   :  { %v1585_v35 = vmul.f32 %v1583_v0, %v1576_v59  ;;  %v1581_v8 = vadd.f32 0.5, %v1580_v58 }
 0x6e6   :  { %v3340_v53 = vadd.f32 %v1586_v60, %v1585_v35 }
 0x6e8   :  { %2179 = vtanh.f32 %v3340_v53 }
 0x6f5   :  { %v2180_v56 = vpop.eup %2179 }
 0x6f6   :  { %v1589_v54 = vmul.f32 %v2180_v56, %v1581_v8 }
 0x6f8   :  { %v1591_v9 = vrot.slane %v1589_v54, 6  ;;  %v3344_v55 = vsel %vm1782_vm6, %v3267_v6, %v1589_v54  ;;  %v1797_v6 = vld [vmem:[#allocation8 + $0x58] sm:$0xff] }
 0x6fa   :  { %1658 = vmatmul.mubr.f32.vlgmr.msra.gmra.mxu0 %v1591_v9  ;;  %1729 = vmatmul.mubr.f32.vlgmr.msra.gmra.mxu1 %v1591_v9 }
 0x6fb   :  { %2030 = vmatpush3.msra.mxu0 %v1801_v61  ;;  %2061 = vmatprep.mubr.msk.f32.mxu0 %vm2393_vm7, %v3669_v28  ;;  %v1882_v61 = vld [vmem:[#allocation10 + $0x10] sm:$0xff] }
 0x6fc   :  { %2031 = vmatprep.subr.mxu0 %v3669_v28  ;;  %2096 = vmatprep.mubr.msk.f32.mxu1 %vm2393_vm7, %v3669_v28 }
 0x6fd   :  { %2032 = vmatpush3.msra.mxu0 %v1800_v2  ;;  %2065 = vmatpush3.msra.mxu1 %v1895_v19  ;;  %v1881_v2 = vld [vmem:[#allocation10 + $0x8] sm:$0xff] }
 0x6fe   :  { %2033 = vmatprep.subr.mxu0 %v3669_v28  ;;  %2066 = vmatprep.subr.mxu1 %v3669_v28 }
 0x6ff   :  { %2034 = vmatpush3.msra.mxu0 %v1799_v5  ;;  %2067 = vmatpush3.msra.mxu1 %v1894_v20  ;;  %v1993_v5 = vld [vmem:[%s3398_s5] ss:$0 sm:$0xff] }
 0x700   :  { %2035 = vmatprep.subr.mxu0 %v3669_v28  ;;  %2068 = vmatprep.subr.mxu1 %v3669_v28 }
 0x701   :  { %2036 = vmatpush3.msra.mxu0 %v1798_v32  ;;  %2069 = vmatpush3.msra.mxu1 %v1893_v21 }
 0x702   :  { %2037 = vmatprep.subr.mxu0 %v3669_v28  ;;  %2070 = vmatprep.subr.mxu1 %v3669_v28 }
 0x703   :  { %2038 = vmatpush3.msra.mxu0 %v1797_v6  ;;  %2071 = vmatpush3.msra.mxu1 %v1892_v22 }
 0x704   :  { %2039 = vmatprep.subr.mxu0 %v3669_v28  ;;  %2072 = vmatprep.subr.mxu1 %v3669_v28 }
 0x705   :  { %2040 = vmatpush3.msra.mxu0 %v1796_v44  ;;  %2073 = vmatpush3.msra.mxu1 %v1891_v23 }
 0x706   :  { %2041 = vmatprep.subr.mxu0 %v3669_v28  ;;  %2074 = vmatprep.subr.mxu1 %v3669_v28 }
 0x707   :  { %2042 = vmatpush3.msra.mxu0 %v1795_v11  ;;  %2075 = vmatpush3.msra.mxu1 %v1890_v24 }
 0x708   :  { %2043 = vmatprep.subr.mxu0 %v3669_v28  ;;  %2076 = vmatprep.subr.mxu1 %v3669_v28 }
 0x709   :  { %2044 = vmatpush3.msra.mxu0 %v1794_v7  ;;  %2077 = vmatpush3.msra.mxu1 %v1889_v25 }
 0x70a   :  { %2045 = vmatprep.subr.mxu0 %v3669_v28  ;;  %2078 = vmatprep.subr.mxu1 %v3669_v28 }
 0x70b   :  { %2046 = vmatpush3.msra.mxu0 %v1793_v12  ;;  %2079 = vmatpush3.msra.mxu1 %v1888_v26 }
 0x70c   :  { %2047 = vmatprep.subr.mxu0 %v3669_v28  ;;  %2080 = vmatprep.subr.mxu1 %v3669_v28 }
 0x70d   :  { %2048 = vmatpush3.msra.mxu0 %v1792_v13  ;;  %2081 = vmatpush3.msra.mxu1 %v1887_v27 }
 0x70e   :  { %2049 = vmatprep.subr.mxu0 %v3669_v28  ;;  %2082 = vmatprep.subr.mxu1 %v3669_v28 }
 0x70f   :  { %2050 = vmatpush3.msra.mxu0 %v1791_v1  ;;  %2083 = vmatpush3.msra.mxu1 %v1886_v29 }
 0x710   :  { %2051 = vmatprep.subr.mxu0 %v3669_v28  ;;  %2084 = vmatprep.subr.mxu1 %v3669_v28 }
 0x711   :  { %2052 = vmatpush3.msra.mxu0 %v1790_v14  ;;  %2085 = vmatpush3.msra.mxu1 %v1885_v30 }
 0x712   :  { %2053 = vmatprep.subr.mxu0 %v3669_v28  ;;  %2086 = vmatprep.subr.mxu1 %v3669_v28 }
 0x713   :  { %2054 = vmatpush3.msra.mxu0 %v1789_v15  ;;  %2087 = vmatpush3.msra.mxu1 %v1884_v31 }
 0x714   :  { %2055 = vmatprep.subr.mxu0 %v3669_v28  ;;  %2088 = vmatprep.subr.mxu1 %v3669_v28 }
 0x715   :  { %2056 = vmatpush3.msra.mxu0 %v1788_v16  ;;  %2089 = vmatpush3.msra.mxu1 %v1883_v33 }
 0x716   :  { %2057 = vmatprep.subr.mxu0 %v3669_v28  ;;  %2090 = vmatprep.subr.mxu1 %v3669_v28 }
 0x717   :  { %2058 = vmatpush3.msra.mxu0 %v1787_v17  ;;  %2091 = vmatpush3.msra.mxu1 %v1882_v61 }
 0x718   :  { %2059 = vmatprep.subr.mxu0 %v3669_v28  ;;  %2092 = vmatprep.subr.mxu1 %v3669_v28 }
 0x719   :  { %2060 = vmatpush3.msra.mxu0 %v1786_v18  ;;  %2093 = vmatpush3.msra.mxu1 %v1881_v2 }
 0x71a   :  { %2094 = vmatprep.subr.mxu1 %v3669_v28 }
 0x7ba   :  { %v1659_v36 = vpop.f32.mrf.mxu0  ;;  %v1730_v38 = vpop.f32.mrf.mxu1 }
 0x7bb   :  { %v1739_v37 = vrot.slane %v1659_v36, 1  ;;  %v1741_v45 = vrot.slane %v1730_v38, 1 }
 0x7bc   :  { %v1661_v39 = vpop.f32.mrf.mxu0  ;;  %v1732_v48 = vpop.f32.mrf.mxu1 }
 0x7bd   :  { %v1747_v40 = vadd.f32 %v1739_v37, %v2736_v62  ;;  %v1740_v42 = vrot.slane %v1661_v39, 1  ;;  %v1749_v49 = vadd.f32 %v1741_v45, %v2742_v3  ;;  %v1742_v50 = vrot.slane %v1732_v48, 1 }
 0x7bf   :  { %v1751_v43 = vmul.f32 0.5, %v1747_v40  ;;  %v1748_v46 = vadd.f32 %v1740_v42, %v3671_v41  ;;  %v1750_v51 = vadd.f32 %v1742_v50, %v2745_v63  ;;  %v1765_v41 = vrot.slane %v3340_v53, 7  ;;  %v1880_v53 = vld [vmem:[#allocation10] sm:$0xff] }
 0x7c0   :  { %2095 = vmatpush3.msra.mxu1 %v1880_v53 }
 0x7c1   :  { %2181 = vtanh.f32 %v1751_v43  ;;  %v1755_v47 = vmul.f32 0.5, %v1748_v46  ;;  %v1760_v52 = vmul.f32 0.5, %v1750_v51 }
 0x7c3   :  { %2183 = vtanh.f32 %v1755_v47 }
 0x7c4   :  { %2185 = vtanh.f32 %v1749_v49 }
 0x7c5   :  { %2187 = vtanh.f32 %v1760_v52 }
 0x7ce   :  { %v2182_v4 = vpop.eup %2181 }
 0x7cf   :  { %v1753_v57 = vmul.f32 0.5, %v2182_v4 }
 0x7d0   :  { %v2184_v59 = vpop.eup %2183 }
 0x7d1   :  { %v1754_v62 = vadd.f32 0.5, %v1753_v57  ;;  %v1757_v0 = vmul.f32 0.5, %v2184_v59  ;;  %v2186_v35 = vpop.eup %2185 }
 0x7d2   :  { %v2188_v3 = vpop.eup %2187 }
 0x7d3   :  { %v1758_v34 = vadd.f32 0.5, %v1757_v0  ;;  %v1768_v10 = vmul.f32 %v2186_v35, %v1754_v62  ;;  %v1762_v8 = vmul.f32 0.5, %v2188_v3 }
 0x7d5   :  { %v1767_v60 = vmul.f32 %v1765_v41, %v1758_v34  ;;  %v1763_v56 = vadd.f32 0.5, %v1762_v8 }
 0x7d7   :  { %v1769_v58 = vadd.f32 %v1768_v10, %v1767_v60 }
 0x7d9   :  { %2189 = vtanh.f32 %v1769_v58 }
 0x7e6   :  { %v2190_v54 = vpop.eup %2189 }
 0x7e7   :  { %v1771_v63 = vmul.f32 %v2190_v54, %v1763_v56 }
 0x7e9   :  { %v1785_v9 = vsel %vm1784_vm8, %v3344_v55, %v1771_v63  ;;  %v1994_v55 = vld [vmem:[%s3400_s7] ss:$0 sm:$0xff] }
 0x7ea   :  { %2062 = vmatmul.mubr.f32.vlgmr.msra.gmra.mxu0 %v1785_v9 }
 0x8aa   :  { %v1875_v32 = vpop.f32.mrf.mxu0 }
 0x8ab   :  { %v1876_v6 = vadd.f32 %v1993_v5, %v1875_v32 }
 0x8ac   :  { %v2063_v44 = vpop.f32.mrf.mxu0 }
 0x8ad   :  { %v1879_v11 = vmax.f32 %v1876_v6, 0.0 }
 0x8af   :  { %2097 = vmatmul.mubr.f32.vlgmr.msra.gmra.mxu1 %v1879_v11 }
 0x96f   :  { %v1969_v7 = vpop.f32.mrf.mxu1 }
 0x970   :  { %v1970_v12 = vadd.f32 %v1994_v55, %v1969_v7 }
 0x971   :  { %v2098_v28 = vpop.f32.mrf.mxu1 }
 0x972   :  { %1973 = vst [vmem:[#allocation11] sm:$0xff] %v1970_v12 }
 0x973   :  { %2366 = shalt.err (!%p2363_p1)
}
 0x974   :  { %1983 = dma.vmem_to_hbm [thread:$0]  %s1981_s13, 128, %s3401_s8, [#allocation4]  }
 0x975   :  { %2381 = dma.done.wait [#allocation4], 128  }
 0x976   :  { %2382 = vsyncadd [#allocation4], 4294967168 }
 0x977   :  { %1987 = vsyncpa [#allocation3], 1 }
 0x978   :  { %1988 = vsyncpa [#allocation6], 1 }
 0x979   :  { %1989 = vsyncpa [#allocation9], 1 }
 0x97a   :  { %1990 = vsyncpa [#allocation4], 1 }

</bundles_post_ra>
